<compile_context>
chip_gen: v7x
topology: tpu7x:2x2x1
jax: 0.10.0
libtpu: 0.0.40
codegen_flags: <defaults>
</compile_context>

<pallas_src>
import jax
import jax.numpy as jnp
from jax.experimental import pallas as pl
from jax.experimental.pallas import tpu as pltpu

SEQ_LEN = 300  # fixed by the PyTorch module


def _pick_energy_dtype():
    """bf16 tanh/energy on v6e/v7x (bf16 EUP/VPU); f32 elsewhere (e.g. v5e)."""
    try:
        kind = jax.devices()[0].device_kind.lower()
    except Exception:
        return jnp.float32
    return jnp.bfloat16 if ("v6" in kind or "v7" in kind) else jnp.float32


def _pick_block_b(batch, max_block=8):
    """Largest divisor of `batch` <= max_block that keeps the grid >= 2 steps."""
    target = max(1, min(max_block, batch // 2))
    for cand in range(target, 0, -1):
        if batch % cand == 0:
            return cand
    return 1


def _make_attention_kernel(block_b, energy_dtype, exact):
    def kernel(proj_ref, enc_ref, w2t_ref, v_ref, out_ref):
        # proj_ref: (Bt, S, 1) f32  -- hoisted hidden @ W1 + bias, per batch, column
        # enc_ref : (Bt, H, S)      -- encoder outputs, transposed, matmul dtype
        # w2t_ref : (S, H)          -- encoder half of attn weight (grid-resident)
        # v_ref   : (S, 1) f32      -- v as a column (grid-resident)
        # out_ref : (Bt, 1, S) f32  -- softmax attention weights (lane-dense)
        w2t = w2t_ref[...]
        v_col = v_ref[...]

        @pl.loop(0, block_b)
        def _(b):
            # energyT[s, t] = tanh( sum_h W2T[s, h] * encT[h, t] + proj[b, s] )
            pre = jnp.dot(w2t, enc_ref[b], preferred_element_type=jnp.float32)  # (S,S)
            pre = pre + proj_ref[b]                        # + (S,1) lane-broadcast
            energy = jnp.tanh(pre.astype(energy_dtype))    # EUP; bf16 on v6e/v7x

            # scores[t] = sum_s v[s] * energyT[s, t] : VPU mul + sublane reduce,
            # f32 accumulation; avoids any transpose of the (S,S) energy.
            scores = jnp.sum(energy.astype(jnp.float32) * v_col,
                             axis=0, keepdims=True)        # (1, S) lane-dense

            # softmax over positions t (lane axis)
            m = jnp.max(scores, axis=-1, keepdims=True)
            e = jnp.exp(scores - m)
            denom = jnp.sum(e, axis=-1, keepdims=True)
            if exact:
                out_ref[b] = e / denom
            else:
                out_ref[b] = e * pl.reciprocal(denom, approx=True)

    return kernel


def attention_forward(hidden, encoder_outputs, attn_w, attn_b, v,
                      *, block_b=None, matmul_dtype=jnp.bfloat16,
                      energy_dtype=None):
    """hidden (B,H), encoder_outputs (B,S,H), attn_w (S,2H), attn_b (S,), v (S,)."""
    B, H = hidden.shape
    S = SEQ_LEN
    assert encoder_outputs.shape == (B, S, H)
    assert attn_w.shape == (S, 2 * H)

    if energy_dtype is None:
        energy_dtype = _pick_energy_dtype()
    if block_b is None:
        block_b = _pick_block_b(B)
    assert B % block_b == 0
    exact = (matmul_dtype == jnp.float32) and (energy_dtype == jnp.float32)

    w1t = attn_w[:, :H]            # (S, H): multiplies the repeated `hidden` half
    w2t = attn_w[:, H:]            # (S, H): multiplies the encoder-output half

    # Hoisted projection: proj[b, s] = hidden[b] . W1[s] + bias[s]
    proj = jnp.matmul(hidden.astype(jnp.float32), w1t.T.astype(jnp.float32),
                      precision=jax.lax.Precision.HIGHEST)
    proj = proj + attn_b.astype(jnp.float32)               # (B, S)
    proj_col = proj[:, :, None]                            # (B, S, 1)

    # Pre-transposed encoder layout -> energy is computed directly as (s, t).
    enc_t = jnp.swapaxes(encoder_outputs, 1, 2).astype(matmul_dtype)   # (B, H, S)
    w2t_c = w2t.astype(matmul_dtype)                                   # (S, H)
    v_col = v.astype(jnp.float32).reshape(S, 1)                        # (S, 1)

    kernel = _make_attention_kernel(block_b, energy_dtype, exact)

    out3 = pl.pallas_call(
        kernel,
        out_shape=jax.ShapeDtypeStruct((B, 1, S), jnp.float32),
        grid_spec=pltpu.PrefetchScalarGridSpec(
            num_scalar_prefetch=0,
            grid=(B // block_b,),
            in_specs=[
                pl.BlockSpec((block_b, S, 1), lambda i: (i, 0, 0)),  # proj column
                pl.BlockSpec((block_b, H, S), lambda i: (i, 0, 0)),  # encT block
                pl.BlockSpec((S, H), lambda i: (0, 0)),              # W2T resident
                pl.BlockSpec((S, 1), lambda i: (0, 0)),              # v resident
            ],
            out_specs=pl.BlockSpec((block_b, 1, S), lambda i: (i, 0, 0)),
        ),
        compiler_params=pltpu.CompilerParams(
            dimension_semantics=("parallel",),
        ),
    )(proj_col, enc_t, w2t_c, v_col)

    return out3.reshape(B, S)


def attention_reference(hidden, encoder_outputs, attn_w, attn_b, v):
    """Pure-JAX transliteration of the PyTorch forward, for verification."""
    B = encoder_outputs.shape[0]
    hid = jnp.repeat(hidden[:, None, :], SEQ_LEN, axis=1)              # (B,S,H)
    cat = jnp.concatenate([hid, encoder_outputs], axis=2)              # (B,S,2H)
    energy = jnp.tanh(
        jnp.matmul(cat, attn_w.T, precision=jax.lax.Precision.HIGHEST) + attn_b)
    energy = jnp.transpose(energy, (0, 2, 1))                          # (B,S,S)
    vv = jnp.broadcast_to(v, (B, SEQ_LEN))[:, None, :]                 # (B,1,S)
    scores = jnp.einsum("bij,bjk->bik", vv, energy,
                        precision=jax.lax.Precision.HIGHEST)[:, 0, :]  # (B,S)
    return jax.nn.softmax(scores, axis=1)


if __name__ == "__main__":
    B, H = 8, 32
    key = jax.random.PRNGKey(0)
    k1, k2, k3, k4, k5 = jax.random.split(key, 5)

    # Deterministic parameter init (shapes from nn.Linear(2H, SEQ_LEN) + v).
    bound = 1.0 / (2.0 * H) ** 0.5
    attn_w = jax.random.uniform(k1, (SEQ_LEN, 2 * H), jnp.float32, -bound, bound)
    attn_b = jax.random.uniform(k2, (SEQ_LEN,), jnp.float32, -bound, bound)
    v = jax.random.uniform(k3, (SEQ_LEN,), jnp.float32)               # torch.rand

    hidden = jax.random.normal(k4, (B, H), jnp.float32)
    encoder_outputs = jax.random.normal(k5, (B, SEQ_LEN, H), jnp.float32)

    ref = attention_reference(hidden, encoder_outputs, attn_w, attn_b, v)

    # (1) Exact f32 path: proves the kernel math matches the PyTorch forward.
    out_exact = attention_forward(hidden, encoder_outputs, attn_w, attn_b, v,
                                  matmul_dtype=jnp.float32,
                                  energy_dtype=jnp.float32)
    out_exact = jax.block_until_ready(out_exact)
    assert out_exact.shape == (B, SEQ_LEN)
    assert jnp.allclose(out_exact, ref, atol=1e-4, rtol=1e-4), "f32 path mismatch"
    assert jnp.allclose(jnp.sum(out_exact, axis=1), 1.0, atol=1e-5)

    # (2) Fast path (bf16 matmul inputs everywhere; bf16 energy/tanh on v6e/v7x,
    #     approx-reciprocal softmax). bf16 gives ~1e-2-level pre-softmax error,
    #     so verify with a relaxed tolerance (per perf-review guidance).
    out_fast = attention_forward(hidden, encoder_outputs, attn_w, attn_b, v)
    out_fast = jax.block_until_ready(out_fast)
    assert out_fast.shape == (B, SEQ_LEN)
    assert jnp.allclose(out_fast, ref, atol=6e-2, rtol=6e-2), "fast path mismatch"
    assert jnp.allclose(jnp.sum(out_fast, axis=1), 1.0, atol=5e-3)

    print("KERNEL_OK")
</pallas_src>

<mosaic_0001>
module attributes {stable_mosaic.version = 11 : i64} {
  func.func @kernel(%arg0: i32, %arg1: memref<4x300x1xf32, #tpu.memory_space<vmem>>, %arg2: memref<4x32x300xf32, #tpu.memory_space<vmem>>, %arg3: memref<300x32xf32, #tpu.memory_space<vmem>>, %arg4: memref<300x1xf32, #tpu.memory_space<vmem>>, %arg5: memref<4x1x300xf32, #tpu.memory_space<vmem>>) attributes {dimension_semantics = [#tpu.dimension_semantics<parallel>], iteration_bounds = array<i64: 2>, scalar_prefetch = 0 : i64, scratch_operands = 0 : i64, tpu.core_type = #tpu.core_type<tc>, window_params = [{transform_indices = @transform_0, window_bounds = array<i64: 4, 300, 1>}, {transform_indices = @transform_1, window_bounds = array<i64: 4, 32, 300>}, {pipeline_mode = #tpu.pipeline_mode<synchronous>, transform_indices = @transform_2, window_bounds = array<i64: 300, 32>}, {pipeline_mode = #tpu.pipeline_mode<synchronous>, transform_indices = @transform_3, window_bounds = array<i64: 300, 1>}, {transform_indices = @transform_4, window_bounds = array<i64: 4, 1, 300>}]} {
    %c0 = arith.constant 0 : index
    %c0_0 = arith.constant 0 : index
    %0 = vector.load %arg3[%c0, %c0_0] : memref<300x32xf32, #tpu.memory_space<vmem>>, vector<300x32xf32>
    %c0_1 = arith.constant 0 : index
    %c0_2 = arith.constant 0 : index
    %1 = vector.load %arg4[%c0_1, %c0_2] : memref<300x1xf32, #tpu.memory_space<vmem>>, vector<300x1xf32>
    %c0_i32 = arith.constant 0 : i32
    %c4_i32 = arith.constant 4 : i32
    %2 = arith.addi %c0_i32, %c4_i32 : i32
    %c1_i32 = arith.constant 1 : i32
    scf.for %arg6 = %c0_i32 to %2 step %c1_i32  : i32 {
      %c1_i32_4 = arith.constant 1 : i32
      %3 = arith.muli %arg6, %c1_i32_4 : i32
      %c0_i32_5 = arith.constant 0 : i32
      %4 = arith.addi %c0_i32_5, %3 : i32
      %5 = arith.index_cast %4 : i32 to index
      %c0_6 = arith.constant 0 : index
      %c0_7 = arith.constant 0 : index
      %6 = vector.load %arg2[%5, %c0_6, %c0_7] : memref<4x32x300xf32, #tpu.memory_space<vmem>>, vector<1x32x300xf32>
      %7 = vector.shape_cast %6 : vector<1x32x300xf32> to vector<32x300xf32>
      %cst = arith.constant dense<0.000000e+00> : vector<300x300xf32>
      %8 = tpu.matmul %0, %7, %cst {dimension_numbers = #tpu.dot_dimension_numbers<[1], [0], [0], [1], [0, 0, 1, 1], [], []>} : vector<300x32xf32>, vector<32x300xf32>, vector<300x300xf32> -> vector<300x300xf32>
      %9 = arith.index_cast %4 : i32 to index
      %c0_8 = arith.constant 0 : index
      %c0_9 = arith.constant 0 : index
      %10 = vector.load %arg1[%9, %c0_8, %c0_9] : memref<4x300x1xf32, #tpu.memory_space<vmem>>, vector<1x300x1xf32>
      %11 = vector.shape_cast %10 : vector<1x300x1xf32> to vector<300x1xf32>
      %12 = vector.broadcast %11 : vector<300x1xf32> to vector<300x300xf32>
      %13 = arith.addf %8, %12 : vector<300x300xf32>
      %14 = math.tanh %13 : vector<300x300xf32>
      %15 = vector.broadcast %1 : vector<300x1xf32> to vector<300x300xf32>
      %16 = arith.mulf %14, %15 : vector<300x300xf32>
      %cst_10 = arith.constant dense<0.000000e+00> : vector<300xf32>
      %17 = vector.multi_reduction <add>, %16, %cst_10 [0] : vector<300x300xf32> to vector<300xf32>
      %18 = vector.shape_cast %17 : vector<300xf32> to vector<1x300xf32>
      %cst_11 = arith.constant dense<0xFF800000> : vector<1xf32>
      %19 = vector.multi_reduction <maximumf>, %18, %cst_11 [1] : vector<1x300xf32> to vector<1xf32>
      %20 = vector.shape_cast %19 : vector<1xf32> to vector<1x1xf32>
      %21 = vector.broadcast %20 : vector<1x1xf32> to vector<1x300xf32>
      %22 = arith.subf %18, %21 : vector<1x300xf32>
      %23 = math.exp %22 : vector<1x300xf32>
      %cst_12 = arith.constant dense<0.000000e+00> : vector<1xf32>
      %24 = vector.multi_reduction <add>, %23, %cst_12 [1] : vector<1x300xf32> to vector<1xf32>
      %25 = vector.shape_cast %24 : vector<1xf32> to vector<1x1xf32>
      %26 = vector.broadcast %25 : vector<1x1xf32> to vector<1x300xf32>
      %27 = arith.divf %23, %26 : vector<1x300xf32>
      %28 = arith.index_cast %4 : i32 to index
      %c0_13 = arith.constant 0 : index
      %c0_14 = arith.constant 0 : index
      %29 = vector.load %arg5[%28, %c0_13, %c0_14] : memref<4x1x300xf32, #tpu.memory_space<vmem>>, vector<1x1x300xf32>
      %30 = vector.shape_cast %29 : vector<1x1x300xf32> to vector<1x300xf32>
      %31 = vector.shape_cast %27 : vector<1x300xf32> to vector<1x1x300xf32>
      tpu.vector_store %arg5[%28, %c0_13, %c0_14], %31 {strides = array<i32>} : memref<4x1x300xf32, #tpu.memory_space<vmem>>, vector<1x1x300xf32>,
    }
    %c4_i32_3 = arith.constant 4 : i32
    return
  }
  func.func @transform_0(%arg0: i32) -> (i32, i32, i32) {
    %c0_i32 = arith.constant 0 : i32
    %c0_i32_0 = arith.constant 0 : i32
    %c0_i32_1 = arith.constant 0 : i32
    return %arg0, %c0_i32, %c0_i32_0 : i32, i32, i32
  }
  func.func @transform_1(%arg0: i32) -> (i32, i32, i32) {
    %c0_i32 = arith.constant 0 : i32
    %c0_i32_0 = arith.constant 0 : i32
    %c0_i32_1 = arith.constant 0 : i32
    return %arg0, %c0_i32, %c0_i32_0 : i32, i32, i32
  }
  func.func @transform_2(%arg0: i32) -> (i32, i32) {
    %c0_i32 = arith.constant 0 : i32
    %c0_i32_0 = arith.constant 0 : i32
    %c0_i32_1 = arith.constant 0 : i32
    return %c0_i32, %c0_i32_0 : i32, i32
  }
  func.func @transform_3(%arg0: i32) -> (i32, i32) {
    %c0_i32 = arith.constant 0 : i32
    %c0_i32_0 = arith.constant 0 : i32
    %c0_i32_1 = arith.constant 0 : i32
    return %c0_i32, %c0_i32_0 : i32, i32
  }
  func.func @transform_4(%arg0: i32) -> (i32, i32, i32) {
    %c0_i32 = arith.constant 0 : i32
    %c0_i32_0 = arith.constant 0 : i32
    %c0_i32_1 = arith.constant 0 : i32
    return %arg0, %c0_i32, %c0_i32_0 : i32, i32, i32
  }
}

</mosaic_0001>

<bundles_post_ra>
// kernel: tpu_custom_call.1
= control target key start
LH: loop header
LB: loop body
LE: loop exit
PB: predicated region body
PF: predicated region fallthrough
CT: control target
= control target key end

     0   :  { %9 = vsyncpa [#allocation3], 0  ;;  %s3923_s0 = inlined_call_operand.vmem [shape: f32[8,300,1], index: 0, kind: input, shape index: {}]   ;;  %s3924_s1 = inlined_call_operand.vmem [shape: f32[8,32,300], index: 1, kind: input, shape index: {}]   ;;  %s3925_s2 = inlined_call_operand.vmem [shape: f32[300,32], index: 2, kind: input, shape index: {}]   ;;  %s3926_s3 = inlined_call_operand.vmem [shape: f32[300,1], index: 3, kind: input, shape index: {}]   ;;  %s3927_s4 = inlined_call_operand.hbm [shape: f32[8,1,300], index: 4, kind: output, shape index: {}]  }
   0x1   :  { %11 = vsyncpa [#allocation3 + $0x1], 0  ;;  %s2579_s15 = smov 0   ;;  %s2581_s16 = smov 0  }
   0x2   :  { %s2583_s17 = smov 0   ;;  %s2585_s18 = smov 0  }
   0x3 LB: > { %s2600_s19 = sadd.s32 4294967295, %s2542_s18   ;;  %s1964_s20 = sadd.s32 4294967294, %s2542_s18   ;;  %s2542_s18 = sphi %s2585_s18, %s4197_s18   ;;  %s2538_s17 = sphi %s2583_s17, %s4196_s17   ;;  %s2534_s16 = sphi %s2581_s16, %s4195_s16   ;;  %s2530_s15 = sphi %s2579_s15, %s4194_s15  }
   0x4   : > { %s2604_s21 = sadd.s32 1, %s2542_s18   ;;  %s118_s22 = sadd.s32 1, %s2538_s17 }
   0x5   : > { %s115_s23 = ssub.s32 %s2542_s18, %s2604_s21  ;;  %p128_p0 = scmp.ne.s32.totalorder %s2538_s17, %s2534_s16 }
   0x6   : > { %p116_p1 = scmp.eq.s32.totalorder %s115_s23, 0  ;;  %p129_p2 = scmp.eq.s32.totalorder %s2600_s19, 1 }
   0x7   : > { %p134_p3 = scmp.ne.s32.totalorder %s2534_s16, %s2530_s15  ;;  %p135_p4 = scmp.eq.s32.totalorder %s1964_s20, 1 }
   0x8   : > { %s2615_s24 = scalar_select %p116_p1, %s2538_s17, %s118_s22  }
   0x9   : > { %p2617_p5 = por %p129_p2, %p128_p0  ;;  %p2621_p6 = por %p135_p4, %p134_p3 }
   0xa   : > { %p1967_p7 = scmp.ge.s32.totalorder %s2542_s18, 1  ;;  %p179_p8 = scmp.lt.s32.totalorder %s2542_s18, 3 }
   0xc   : > { %p180_p9 = pnand %p1967_p7, %p179_p8 }
   0xe   : > { %183 = sbr.rel (%p180_p9) target bundleno = 813 (0x32d), region = 36 }
  0x15   : > { %s209_s27 = sand.u32 1, %s2534_s16   ;;  %s1968_s28 = sshll.u32 %s2600_s19, 2  ;;  %v2632_v0 = vld [vmem:[%s3925_s2] sm:$0xff]  ;;  %v2637_v1 = vld [vmem:[%s3925_s2 + $0x8] sm:$0xff]  ;;  %v2642_v2 = vld [vmem:[%s3925_s2 + $0x10] sm:$0xff] }
  0x16   : > { %3991 = vst [vmem:[#allocation5_spill] sm:$0xff] %v2632_v0  ;;  %3992 = vst [vmem:[#allocation6_spill] sm:$0xff] %v2637_v1  ;;  %s2646_s9 = smul.u32 12, %s209_s27  ;;  %p213_p10 = scmp.lt.s32.totalorder %s1968_s28, 7  ;;  %v2651_v3 = vld [vmem:[%s3925_s2 + $0x18] sm:$0xff]  ;;  %v2656_v4 = vld [vmem:[%s3925_s2 + $0x20] sm:$0xff] }
  0x17   : > { %3993 = vst [vmem:[#allocation7_spill] sm:$0xff] %v2642_v2  ;;  %3994 = vst [vmem:[#allocation8_spill] sm:$0xff] %v2651_v3  ;;  %v2661_v5 = vld [vmem:[%s3925_s2 + $0x28] sm:$0xff]  ;;  %v2666_v6 = vld [vmem:[%s3925_s2 + $0x30] sm:$0xff] }
  0x18   : > { %3995 = vst [vmem:[#allocation9_spill] sm:$0xff] %v2656_v4  ;;  %3996 = vst [vmem:[#allocation10_spill] sm:$0xff] %v2661_v5  ;;  %v2671_v7 = vld [vmem:[%s3925_s2 + $0x38] sm:$0xff]  ;;  %v2676_v8 = vld [vmem:[%s3925_s2 + $0x40] sm:$0xff]  ;;  %s4199_s28 = smov (!%p213_p10, %s1968_s28), 7  ;;  %s211_s29 = scalar_lea.vmem [#allocation2], %s2646_s9 }
  0x19   : > { %3997 = vst [vmem:[#allocation11_spill] sm:$0xff] %v2666_v6  ;;  %3998 = vst [vmem:[#allocation12_spill] sm:$0xff] %v2671_v7  ;;  %v2681_v9 = vld [vmem:[%s3925_s2 + $0x48] sm:$0xff]  ;;  %v2686_v10 = vld [vmem:[%s3925_s2 + $0x50] sm:$0xff]  ;;  %s2183_s12 = smul.u32 304, %s4199_s28 }
  0x1a   : > { %3999 = vst [vmem:[#allocation13_spill] sm:$0xff] %v2676_v8  ;;  %4000 = vst [vmem:[#allocation14_spill] sm:$0xff] %v2681_v9  ;;  %v2691_v11 = vld [vmem:[%s3925_s2 + $0x58] sm:$0xff]  ;;  %v2696_v12 = vld [vmem:[%s3925_s2 + $0x60] sm:$0xff]  ;;  %s2184_s30 = smul.u32 96, %s4199_s28 }
  0x1b   : > { %4001 = vst [vmem:[#allocation15_spill] sm:$0xff] %v2686_v10  ;;  %4002 = vst [vmem:[#allocation16_spill] sm:$0xff] %v2691_v11  ;;  %v2701_v13 = vld [vmem:[%s3925_s2 + $0x68] sm:$0xff]  ;;  %v2706_v14 = vld [vmem:[%s3925_s2 + $0x70] sm:$0xff]  ;;  %s2756_s20 = scalar_lea.vmem %s3923_s0, %s2183_s12 }
  0x1c   : > { %4003 = vst [vmem:[#allocation17_spill] sm:$0xff] %v2696_v12  ;;  %4004 = vst [vmem:[#allocation18_spill] sm:$0xff] %v2701_v13  ;;  %v2711_v15 = vld [vmem:[%s3925_s2 + $0x78] sm:$0xff]  ;;  %v2716_v16 = vld [vmem:[%s3925_s2 + $0x80] sm:$0xff]  ;;  %s2776_s12 = scalar_lea.vmem %s3924_s1, %s2184_s30  ;;  %s3024_s30 = smov 0  }
  0x1d   : > { %4005 = vst [vmem:[#allocation19_spill] sm:$0xff] %v2706_v14  ;;  %4006 = vst [vmem:[#allocation20_spill] sm:$0xff] %v2711_v15  ;;  %v2721_v17 = vld [vmem:[%s3925_s2 + $0x88] sm:$0xff]  ;;  %v2726_v18 = vld [vmem:[%s3925_s2 + $0x90] sm:$0xff] }
  0x1e   : > { %4007 = vst [vmem:[#allocation21_spill] sm:$0xff] %v2716_v16  ;;  %4008 = vst [vmem:[#allocation22_spill] sm:$0xff] %v2721_v17  ;;  %v2731_v19 = vld [vmem:[%s3925_s2 + $0x98] sm:$0xff]  ;;  %v2736_v20 = vld [vmem:[%s3925_s2 + $0xa0] sm:$0xff] }
  0x1f   : > { %4009 = vst [vmem:[#allocation23_spill] sm:$0xff] %v2726_v18  ;;  %4010 = vst [vmem:[#allocation24_spill] sm:$0xff] %v2731_v19  ;;  %v2741_v21 = vld [vmem:[%s3925_s2 + $0xa8] sm:$0xff]  ;;  %v2746_v22 = vld [vmem:[%s3925_s2 + $0xb0] sm:$0xff] }
  0x20   : > { %4011 = vst [vmem:[#allocation25_spill] sm:$0xff] %v2736_v20  ;;  %4012 = vst [vmem:[#allocation26_spill] sm:$0xff] %v2741_v21  ;;  %v2751_v23 = vld [vmem:[%s3925_s2 + $0xb8] sm:$0xff]  ;;  %v2761_v24 = vld [vmem:[%s3925_s2 + $0xc0] sm:$0xff] }
  0x21   : > { %4013 = vst [vmem:[#allocation27_spill] sm:$0xff] %v2746_v22  ;;  %4014 = vst [vmem:[#allocation28_spill] sm:$0xff] %v2751_v23  ;;  %v2766_v25 = vld [vmem:[%s3925_s2 + $0xc8] sm:$0xff]  ;;  %v2771_v26 = vld [vmem:[%s3925_s2 + $0xd0] sm:$0xff] }
  0x22   : > { %4015 = vst [vmem:[#allocation29_spill] sm:$0xff] %v2761_v24  ;;  %4016 = vst [vmem:[#allocation30_spill] sm:$0xff] %v2766_v25  ;;  %v2781_v27 = vld [vmem:[%s3925_s2 + $0xd8] sm:$0xff]  ;;  %v2786_v28 = vld [vmem:[%s3925_s2 + $0xe0] sm:$0xff] }
  0x23   : > { %4017 = vst [vmem:[#allocation31_spill] sm:$0xff] %v2771_v26  ;;  %4018 = vst [vmem:[#allocation32_spill] sm:$0xff] %v2781_v27  ;;  %v2791_v29 = vld [vmem:[%s3925_s2 + $0xe8] sm:$0xff]  ;;  %v2796_v30 = vld [vmem:[%s3925_s2 + $0xf0] sm:$0xff] }
  0x24   : > { %4019 = vst [vmem:[#allocation33_spill] sm:$0xff] %v2786_v28  ;;  %4020 = vst [vmem:[#allocation34_spill] sm:$0xff] %v2791_v29  ;;  %v2801_v31 = vld [vmem:[%s3925_s2 + $0xf8] sm:$0xff]  ;;  %v2806_v32 = vld [vmem:[%s3925_s2 + $0x100] sm:$0xff] }
  0x25   : > { %4021 = vst [vmem:[#allocation35_spill] sm:$0xff] %v2796_v30  ;;  %4022 = vst [vmem:[#allocation36_spill] sm:$0xff] %v2801_v31  ;;  %v2811_v33 = vld [vmem:[%s3925_s2 + $0x108] sm:$0xff]  ;;  %v2816_v34 = vld [vmem:[%s3925_s2 + $0x110] sm:$0xff] }
  0x26   : > { %4023 = vst [vmem:[#allocation37_spill] sm:$0xff] %v2806_v32  ;;  %4024 = vst [vmem:[#allocation38_spill] sm:$0xff] %v2811_v33  ;;  %v2821_v35 = vld [vmem:[%s3925_s2 + $0x118] sm:$0xff]  ;;  %v2826_v36 = vld [vmem:[%s3925_s2 + $0x120] sm:$0xff] }
  0x27   : > { %4025 = vst [vmem:[#allocation39_spill] sm:$0xff] %v2816_v34  ;;  %4026 = vst [vmem:[#allocation40_spill] sm:$0xff] %v2821_v35  ;;  %v2831_v37 = vld [vmem:[%s3925_s2 + $0x128] sm:$0xf]  ;;  %v2836_v38 = vld [vmem:[%s3926_s3] sm:$0xff] }
  0x28   : > { %4027 = vst [vmem:[#allocation41_spill] sm:$0xff] %v2826_v36  ;;  %4028 = vst [vmem:[#allocation42_spill] sm:$0xff] %v2831_v37  ;;  %v2841_v39 = vld [vmem:[%s3926_s3 + $0x8] sm:$0xff]  ;;  %v2846_v40 = vld [vmem:[%s3926_s3 + $0x10] sm:$0xff] }
  0x29   : > { %4029 = vst [vmem:[#allocation43_spill] sm:$0xff] %v2836_v38  ;;  %4030 = vst [vmem:[#allocation44_spill] sm:$0xff] %v2841_v39  ;;  %v2851_v41 = vld [vmem:[%s3926_s3 + $0x18] sm:$0xff]  ;;  %v2856_v42 = vld [vmem:[%s3926_s3 + $0x20] sm:$0xff] }
  0x2a   : > { %4031 = vst [vmem:[#allocation45_spill] sm:$0xff] %v2846_v40  ;;  %4032 = vst [vmem:[#allocation46_spill] sm:$0xff] %v2851_v41  ;;  %v2861_v43 = vld [vmem:[%s3926_s3 + $0x28] sm:$0xff]  ;;  %v2866_v44 = vld [vmem:[%s3926_s3 + $0x30] sm:$0xff] }
  0x2b   : > { %4033 = vst [vmem:[#allocation47_spill] sm:$0xff] %v2856_v42  ;;  %4034 = vst [vmem:[#allocation48_spill] sm:$0xff] %v2861_v43  ;;  %v2871_v45 = vld [vmem:[%s3926_s3 + $0x38] sm:$0xff]  ;;  %v2876_v46 = vld [vmem:[%s3926_s3 + $0x40] sm:$0xff] }
  0x2c   : > { %4035 = vst [vmem:[#allocation49_spill] sm:$0xff] %v2866_v44  ;;  %4036 = vst [vmem:[#allocation50_spill] sm:$0xff] %v2871_v45  ;;  %v2881_v47 = vld [vmem:[%s3926_s3 + $0x48] sm:$0xff]  ;;  %v2886_v48 = vld [vmem:[%s3926_s3 + $0x50] sm:$0xff] }
  0x2d   : > { %4037 = vst [vmem:[#allocation51_spill] sm:$0xff] %v2876_v46  ;;  %4038 = vst [vmem:[#allocation52_spill] sm:$0xff] %v2881_v47  ;;  %v2891_v49 = vld [vmem:[%s3926_s3 + $0x58] sm:$0xff]  ;;  %v2896_v50 = vld [vmem:[%s3926_s3 + $0x60] sm:$0xff] }
  0x2e   : > { %4039 = vst [vmem:[#allocation53_spill] sm:$0xff] %v2886_v48  ;;  %4040 = vst [vmem:[#allocation54_spill] sm:$0xff] %v2891_v49  ;;  %v2901_v51 = vld [vmem:[%s3926_s3 + $0x68] sm:$0xff]  ;;  %v2906_v52 = vld [vmem:[%s3926_s3 + $0x70] sm:$0xff] }
  0x2f   : > { %4041 = vst [vmem:[#allocation55_spill] sm:$0xff] %v2896_v50  ;;  %4042 = vst [vmem:[#allocation56_spill] sm:$0xff] %v2901_v51  ;;  %v2911_v53 = vld [vmem:[%s3926_s3 + $0x78] sm:$0xff]  ;;  %v2916_v54 = vld [vmem:[%s3926_s3 + $0x80] sm:$0xff] }
  0x30   : > { %4043 = vst [vmem:[#allocation57_spill] sm:$0xff] %v2906_v52  ;;  %4044 = vst [vmem:[#allocation58_spill] sm:$0xff] %v2911_v53  ;;  %v2921_v55 = vld [vmem:[%s3926_s3 + $0x88] sm:$0xff]  ;;  %v2926_v56 = vld [vmem:[%s3926_s3 + $0x90] sm:$0xff] }
  0x31   : > { %4045 = vst [vmem:[#allocation59_spill] sm:$0xff] %v2916_v54  ;;  %4046 = vst [vmem:[#allocation60_spill] sm:$0xff] %v2921_v55  ;;  %v2931_v57 = vld [vmem:[%s3926_s3 + $0x98] sm:$0xff]  ;;  %v2936_v58 = vld [vmem:[%s3926_s3 + $0xa0] sm:$0xff] }
  0x32   : > { %4047 = vst [vmem:[#allocation61_spill] sm:$0xff] %v2926_v56  ;;  %4048 = vst [vmem:[#allocation62_spill] sm:$0xff] %v2931_v57  ;;  %v2941_v59 = vld [vmem:[%s3926_s3 + $0xa8] sm:$0xff]  ;;  %v2946_v60 = vld [vmem:[%s3926_s3 + $0xb0] sm:$0xff] }
  0x33   : > { %4049 = vst [vmem:[#allocation63_spill] sm:$0xff] %v2936_v58  ;;  %4050 = vst [vmem:[#allocation64_spill] sm:$0xff] %v2941_v59  ;;  %v2951_v61 = vld [vmem:[%s3926_s3 + $0xb8] sm:$0xff]  ;;  %v2956_v62 = vld [vmem:[%s3926_s3 + $0xc0] sm:$0xff] }
  0x34   : > { %4051 = vst [vmem:[#allocation65_spill] sm:$0xff] %v2946_v60  ;;  %4052 = vst [vmem:[#allocation66_spill] sm:$0xff] %v2951_v61  ;;  %v2961_v63 = vld [vmem:[%s3926_s3 + $0xc8] sm:$0xff]  ;;  %v2966_v60 = vld [vmem:[%s3926_s3 + $0xd0] sm:$0xff] }
  0x35   : > { %4053 = vst [vmem:[#allocation67_spill] sm:$0xff] %v2956_v62  ;;  %4054 = vst [vmem:[#allocation68_spill] sm:$0xff] %v2961_v63  ;;  %v2971_v28 = vld [vmem:[%s3926_s3 + $0xd8] sm:$0xff]  ;;  %v2976_v61 = vld [vmem:[%s3926_s3 + $0xe0] sm:$0xff] }
  0x36   : > { %4055 = vst [vmem:[#allocation69_spill] sm:$0xff] %v2966_v60  ;;  %4056 = vst [vmem:[#allocation70_spill] sm:$0xff] %v2971_v28  ;;  %v2981_v62 = vld [vmem:[%s3926_s3 + $0xe8] sm:$0xff]  ;;  %v2986_v63 = vld [vmem:[%s3926_s3 + $0xf0] sm:$0xff] }
  0x37   : > { %4057 = vst [vmem:[#allocation71_spill] sm:$0xff] %v2976_v61  ;;  %4058 = vst [vmem:[#allocation72_spill] sm:$0xff] %v2981_v62  ;;  %v2991_v60 = vld [vmem:[%s3926_s3 + $0xf8] sm:$0xff]  ;;  %v2996_v28 = vld [vmem:[%s3926_s3 + $0x100] sm:$0xff] }
  0x38   : > { %4059 = vst [vmem:[#allocation73_spill] sm:$0xff] %v2986_v63  ;;  %4060 = vst [vmem:[#allocation74_spill] sm:$0xff] %v2991_v60  ;;  %v3001_v61 = vld [vmem:[%s3926_s3 + $0x108] sm:$0xff]  ;;  %v3006_v62 = vld [vmem:[%s3926_s3 + $0x110] sm:$0xff] }
  0x39   : > { %4061 = vst [vmem:[#allocation75_spill] sm:$0xff] %v2996_v28  ;;  %4062 = vst [vmem:[#allocation76_spill] sm:$0xff] %v3001_v61  ;;  %v3011_v63 = vld [vmem:[%s3926_s3 + $0x118] sm:$0xff]  ;;  %v3016_v60 = vld [vmem:[%s3926_s3 + $0x120] sm:$0xff] }
  0x3a   : > { %4063 = vst [vmem:[#allocation77_spill] sm:$0xff] %v3006_v62  ;;  %4064 = vst [vmem:[#allocation78_spill] sm:$0xff] %v3011_v63  ;;  %v3021_v28 = vld [vmem:[%s3926_s3 + $0x128] sm:$0xf] }
  0x3b   : > { %4065 = vst [vmem:[#allocation79_spill] sm:$0xff] %v3016_v60  ;;  %4066 = vst [vmem:[#allocation80_spill] sm:$0xff] %v3021_v28 }
  0x3c LB: >> { %v4067_v37 = vld [vmem:[#allocation42_spill] sm:$0xff]  ;;  %v4068_v36 = vld [vmem:[#allocation41_spill] sm:$0xff]  ;;  %v4069_v35 = vld [vmem:[#allocation40_spill] sm:$0xff]  ;;  %v2548_v62 = vmov 0   ;;  %s324_s5 = smul.u32 304, %s2546_s30  ;;  %v3929_v60 = vmov 0.0   ;;  %s2546_s30 = sphi %s3024_s30, %s308_s30  }
  0x3d   : >> { %v4070_v34 = vld [vmem:[#allocation39_spill] sm:$0xff]  ;;  %v4071_v33 = vld [vmem:[#allocation38_spill] sm:$0xff]  ;;  %v4072_v32 = vld [vmem:[#allocation37_spill] sm:$0xff]  ;;  %2239 = vset.pattern.permute.xlu1 %v2548_v62  ;;  %2238 = vset.pattern.permute.xlu0 %v2548_v62  ;;  %s2054_s6 = smul.u32 96, %s2546_s30  ;;  %vm554_vm0 = vcmask 261120   ;;  %vm1724_vm1 = vcmask 359424  }
  0x3e   : >> { %v4073_v31 = vld [vmem:[#allocation36_spill] sm:$0xff]  ;;  %v4074_v30 = vld [vmem:[#allocation35_spill] sm:$0xff]  ;;  %v4075_v29 = vld [vmem:[#allocation34_spill] sm:$0xff]  ;;  %733 = vmatprep.mubr.f32.mxu0 %v3929_v60  ;;  %907 = vmatprep.mubr.f32.mxu1 %v3929_v60  ;;  %s3034_s7 = scalar_lea.vmem %s2756_s20, %s324_s5  ;;  %vm1798_vm2 = vcmask 355328   ;;  %vm1671_vm3 = vcmask 1043456   ;;  %s1857_s10 = smul.u32 3, %s2546_s30 }
  0x3f   : >> { %v4076_v20 = vld [vmem:[#allocation25_spill] sm:$0xff]  ;;  %v4077_v19 = vld [vmem:[#allocation24_spill] sm:$0xff]  ;;  %v4078_v18 = vld [vmem:[#allocation23_spill] sm:$0xff]  ;;  %s3039_s8 = scalar_lea.vmem %s2776_s12, %s2054_s6  ;;  %s308_s30 = sadd.s32 1, %s2546_s30  }
  0x40   : >> { %v4079_v17 = vld [vmem:[#allocation22_spill] sm:$0xff]  ;;  %v4080_v16 = vld [vmem:[#allocation21_spill] sm:$0xff]  ;;  %v4081_v15 = vld [vmem:[#allocation20_spill] sm:$0xff]  ;;  %s1858_s11 = scalar_lea.vmem %s211_s29, %s1857_s10 [#allocation2]  ;;  %p305_p11 = scmp.ge.s32.totalorder %s308_s30, 4  }
  0x41   : >> { %v4082_v14 = vld [vmem:[#allocation19_spill] sm:$0xff]  ;;  %v4083_v13 = vld [vmem:[#allocation18_spill] sm:$0xff]  ;;  %v4084_v12 = vld [vmem:[#allocation17_spill] sm:$0xff]  ;;  %s2185_s13 = smul.u32 (%p305_p11), 192, %s2600_s19  ;;  %s1879_s14 = sshll.u32 (%p305_p11), %s211_s29, 4  ;;  %s3878_s14 = int_to_ptr.vmem [resolvable:$true] %s1879_s14 }
  0x42   : >> { %v4085_v11 = vld [vmem:[#allocation16_spill] sm:$0xff]  ;;  %v4086_v10 = vld [vmem:[#allocation15_spill] sm:$0xff]  ;;  %v4087_v9 = vld [vmem:[#allocation14_spill] sm:$0xff]  ;;  %s3882_s30 = scalar_lea.sflag (%p305_p11), [#allocation3], %s209_s27  ;;  %s2476_s20 = scalar_lea.vmem (%p305_p11), %s3878_s14, 192 }
  0x43   : >> { %v4088_v8 = vld [vmem:[#allocation13_spill] sm:$0xff]  ;;  %v4089_v7 = vld [vmem:[#allocation12_spill] sm:$0xff]  ;;  %v4090_v6 = vld [vmem:[#allocation11_spill] sm:$0xff]  ;;  %s3876_s23 = scalar_lea.hbm (%p305_p11), %s3927_s4, %s2185_s13  ;;  %p2477_p12 = scmp.ne.s32.totalorder (%p305_p11), %s3878_s14, %s2476_s20 }
  0x44   : >> { %v4091_v5 = vld [vmem:[#allocation10_spill] sm:$0xff]  ;;  %v4092_v4 = vld [vmem:[#allocation9_spill] sm:$0xff]  ;;  %v4093_v3 = vld [vmem:[#allocation8_spill] sm:$0xff]  ;;  %s2551_s19 = smov (%p305_p11), [#allocation2]  }
  0x45   : >> { %v4094_v2 = vld [vmem:[#allocation7_spill] sm:$0xff]  ;;  %v4095_v1 = vld [vmem:[#allocation6_spill] sm:$0xff]  ;;  %v4096_v0 = vld [vmem:[#allocation5_spill] sm:$0xff]  ;;  %p2478_p13 = pnand (%p305_p11), %p2477_p12, %p2617_p5  ;;  %s2480_s9 = sshll.u32 (%p305_p11), %s2551_s19, 4  ;;  %s2481_s9 = int_to_ptr.vmem [resolvable:$false] %s2480_s9 }
  0x46   : >> { %v328_v28 = vld [vmem:[%s3034_s7 + $0x10] sm:$0xff]  ;;  %v326_v63 = vld [vmem:[%s3034_s7] sm:$0xff]  ;;  %v313_v62 = vld [vmem:[%s3039_s8 + $0x8] sm:$0xff]  ;;  %s2482_s12 = scalar_lea.vmem (%p305_p11), %s2481_s9, 384  ;;  %p2483_p1 = scmp.lt.s32.totalorder (%p305_p11), %s3878_s14, %s2481_s9 }
  0x47   : >> { %376 = vperm.xlu1 %2239, %v328_v28   ;;  %366 = vperm.xlu0 %2238, %v326_v63   ;;  %v316_v60 = vld [vmem:[%s3039_s8 + $0x20] sm:$0xff]  ;;  %v329_v27 = vld [vmem:[%s3034_s7 + $0x18] sm:$0xff]  ;;  %v327_v25 = vld [vmem:[%s3034_s7 + $0x8] sm:$0xff]  ;;  %p2479_p0 = pneg (%p305_p11), %p2478_p13  ;;  %p2484_p2 = scmp.lt.s32.totalorder (%p305_p11), %s2482_s12, %s2476_s20 }
  0x48   : >> { %v312_v61 = vld [vmem:[%s3039_s8] sm:$0xff]  ;;  %v2162_v59 = vpack.c.bf16 %v316_v60, %v313_v62  ;;  %v315_v26 = vld [vmem:[%s3039_s8 + $0x18] sm:$0xff]  ;;  %v322_v23 = vld [vmem:[%s3039_s8 + $0x50] sm:$0xff] }
  0x49   : >> { %v319_v58 = vld [vmem:[%s3039_s8 + $0x38] sm:$0xff]  ;;  %v2164_v24 = vpack.c.bf16 %v315_v26, %v312_v61  ;;  %v318_v57 = vld [vmem:[%s3039_s8 + $0x30] sm:$0xff]  ;;  %v321_v22 = vld [vmem:[%s3039_s8 + $0x48] sm:$0xff]  ;;  %p2485_p3 = por (%p305_p11), %p2484_p2, %p2483_p1 }
  0x4a   : >> { %2163 = vmatprep.subr.bf16.mxu0 %v2162_v59  ;;  %2178 = vmatprep.subr.bf16.mxu1 %v2162_v59  ;;  %v2166_v28 = vpack.c.bf16 %v322_v23, %v319_v58  ;;  %v2168_v63 = vpack.c.bf16 %v321_v22, %v318_v57  ;;  %v314_v60 = vld [vmem:[%s3039_s8 + $0x10] sm:$0xff]  ;;  %v317_v62 = vld [vmem:[%s3039_s8 + $0x28] sm:$0xff]  ;;  %v330_v61 = vld [vmem:[%s3034_s7 + $0x20] sm:$0xff] }
  0x4b   : >> { %2165 = vmatpush1.bf16.msra.mxu0 %v2164_v24  ;;  %2180 = vmatpush1.bf16.msra.mxu1 %v2164_v24  ;;  %v331_v26 = vld [vmem:[%s3034_s7 + $0x28] sm:$0xff]  ;;  %v2170_v21 = vpack.c.bf16 %v317_v62, %v314_v60  ;;  %v333_v23 = vld [vmem:[%s3034_s7 + $0x38] sm:$0xff]  ;;  %v332_v24 = vld [vmem:[%s3034_s7 + $0x30] sm:$0xff]  ;;  %p2486_p4 = pnand (%p305_p11), %p2485_p3, %p2479_p0 }
  0x4c   : >> { %381 = vperm.xlu1 %2239, %v329_v27   ;;  %371 = vperm.xlu0 %2238, %v327_v25   ;;  %v320_v22 = vld [vmem:[%s3039_s8 + $0x40] sm:$0xff]  ;;  %v323_v25 = vld [vmem:[%s3039_s8 + $0x58] sm:$0xff]  ;;  %v4097_v27 = vmov 0.0   ;;  %v4098_v39 = vld [vmem:[#allocation44_spill] sm:$0xff] }
  0x4d   : >> { %2167 = vmatprep.subr.bf16.mxu0 %v2166_v28  ;;  %2179 = vmatprep.subr.bf16.mxu1 %v2166_v28  ;;  %v2174_v57 = vpack.c.bf16 %v323_v25, %v320_v22  ;;  %v4099_v38 = vld [vmem:[#allocation43_spill] sm:$0xff]  ;;  %v334_v58 = vld [vmem:[%s3034_s7 + $0x40] sm:$0xff]  ;;  %v4100_v40 = vld [vmem:[#allocation45_spill] sm:$0xff] }
  0x4e   : >> { %v4101_v41 = vld [vmem:[#allocation46_spill] sm:$0xff]  ;;  %v336_v59 = vld [vmem:[%s3034_s7 + $0x50] sm:$0xff]  ;;  %v4102_v42 = vld [vmem:[#allocation47_spill] sm:$0xff] }
  0x4f   : >> { %2169 = vmatpush1.bf16.msra.mxu0 %v2168_v63  ;;  %2181 = vmatpush1.bf16.msra.mxu1 %v2168_v63  ;;  %v337_v28 = vld [vmem:[%s3034_s7 + $0x58] sm:$0xff]  ;;  %v4103_v43 = vld [vmem:[#allocation48_spill] sm:$0xff]  ;;  %v338_v63 = vld [vmem:[%s3034_s7 + $0x60] sm:$0xff] }
  0x50   : >> { %391 = vperm.xlu1 %2239, %v331_v26   ;;  %386 = vperm.xlu0 %2238, %v330_v61   ;;  %v4104_v44 = vld [vmem:[#allocation49_spill] sm:$0xff]  ;;  %v339_v60 = vld [vmem:[%s3034_s7 + $0x68] sm:$0xff]  ;;  %v4105_v45 = vld [vmem:[#allocation50_spill] sm:$0xff] }
  0x51   : >> { %2171 = vmatprep.subr.bf16.mxu1 %v2170_v21  ;;  %v340_v62 = vld [vmem:[%s3034_s7 + $0x70] sm:$0xff]  ;;  %v4106_v46 = vld [vmem:[#allocation51_spill] sm:$0xff]  ;;  %v341_v26 = vld [vmem:[%s3034_s7 + $0x78] sm:$0xff] }
  0x52   : >> { %1973 = vmatmul.mubr.msk.f32.vlgmr.msra.gmra.mrb[0].mxu0 %vm554_vm0, %v4096_v0  ;;  %2002 = vmatmul.mubr.msk.f32.vlgmr.msra.gmra.mrb[0].mxu1 %vm554_vm0, %v4075_v29  ;;  %v4107_v47 = vld [vmem:[#allocation52_spill] sm:$0xff]  ;;  %v342_v61 = vld [vmem:[%s3034_s7 + $0x80] sm:$0xff]  ;;  %v4108_v48 = vld [vmem:[#allocation53_spill] sm:$0xff] }
  0x53   : >> { %739 = vmatprep.mubr.f32.mxu0 %v4097_v27  ;;  %913 = vmatprep.mubr.f32.mxu1 %v4097_v27  ;;  %v4109_v49 = vld [vmem:[#allocation54_spill] sm:$0xff]  ;;  %v4110_v50 = vld [vmem:[#allocation55_spill] sm:$0xff]  ;;  %v345_v22 = vld [vmem:[%s3034_s7 + $0x98] sm:$0xff] }
  0x54   : >> { %401 = vperm.xlu1 %2239, %v333_v23   ;;  %396 = vperm.xlu0 %2238, %v332_v24   ;;  %v343_v23 = vld [vmem:[%s3034_s7 + $0x88] sm:$0xff]  ;;  %v344_v24 = vld [vmem:[%s3034_s7 + $0x90] sm:$0xff]  ;;  %v346_v25 = vld [vmem:[%s3034_s7 + $0xa0] sm:$0xff] }
  0x55   : >> { %2173 = vmatpush3.bf16.msra.mxu1 %v2170_v21  ;;  %v335_v21 = vld [vmem:[%s3034_s7 + $0x48] sm:$0xff]  ;;  %v4111_v51 = vld [vmem:[#allocation56_spill] sm:$0xff]  ;;  %v4112_v52 = vld [vmem:[#allocation57_spill] sm:$0xff] }
  0x56   : >> { %1974 = vmatmul.mubr.msk.f32.gmra.mrb[2].mxu0 %vm554_vm0, %v4095_v1  ;;  %2003 = vmatmul.mubr.msk.f32.gmra.mrb[2].mxu1 %vm554_vm0, %v4074_v30  ;;  %v4113_v53 = vld [vmem:[#allocation58_spill] sm:$0xff]  ;;  %v4114_v54 = vld [vmem:[#allocation59_spill] sm:$0xff]  ;;  %v4115_v55 = vld [vmem:[#allocation60_spill] sm:$0xff] }
  0x57   : >> { %745 = vmatprep.mubr.f32.mxu0 %v4097_v27  ;;  %919 = vmatprep.mubr.f32.mxu1 %v4097_v27  ;;  %v4116_v56 = vld [vmem:[#allocation61_spill] sm:$0xff] }
  0x58   : >> { %1338 = vperm.xlu1 %2239, %v4098_v39   ;;  %1333 = vperm.xlu0 %2238, %v4099_v38  }
  0x59   : >> { %2175 = vmatprep.subr.bf16.mxu1 %v2174_v57 }
  0x5a   : >> { %1975 = vmatmul.mubr.msk.f32.gmra.mrb[4].mxu0 %vm554_vm0, %v4094_v2  ;;  %2004 = vmatmul.mubr.msk.f32.gmra.mrb[4].mxu1 %vm554_vm0, %v4073_v31 }
  0x5b   : >> { %751 = vmatprep.mubr.f32.mxu0 %v4097_v27  ;;  %925 = vmatprep.mubr.f32.mxu1 %v4097_v27 }
  0x5c   : >> { %1343 = vperm.xlu1 %2239, %v4100_v40   ;;  %406 = vperm.xlu0 %2238, %v334_v58   ;;  %v348_v58 = vld [vmem:[%s3034_s7 + $0xb0] sm:$0xff] }
  0x5d   : >> { %2177 = vmatpush3.bf16.msra.mxu1 %v2174_v57  ;;  %v347_v57 = vld [vmem:[%s3034_s7 + $0xa8] sm:$0xff] }
  0x5e   : >> { %1976 = vmatmul.mubr.msk.f32.gmra.mrb[6].mxu0 %vm554_vm0, %v4093_v3  ;;  %2005 = vmatmul.mubr.msk.f32.gmra.mrb[6].mxu1 %vm554_vm0, %v4072_v32 }
  0x5f   : >> { %757 = vmatprep.mubr.f32.mxu0 %v4097_v27  ;;  %931 = vmatprep.mubr.f32.mxu1 %v4097_v27 }
  0x60   : >> { %1348 = vperm.xlu1 %2239, %v4101_v41   ;;  %411 = vperm.xlu0 %2238, %v335_v21   ;;  %v349_v21 = vld [vmem:[%s3034_s7 + $0xb8] sm:$0xff] }
  0x62   : >> { %1977 = vmatmul.mubr.msk.f32.gmra.mrb[8].mxu0 %vm554_vm0, %v4092_v4  ;;  %2006 = vmatmul.mubr.msk.f32.gmra.mrb[8].mxu1 %vm554_vm0, %v4071_v33 }
  0x63   : >> { %763 = vmatprep.mubr.f32.mxu0 %v4097_v27  ;;  %937 = vmatprep.mubr.f32.mxu1 %v4097_v27 }
  0x64   : >> { %1353 = vperm.xlu1 %2239, %v4102_v42   ;;  %416 = vperm.xlu0 %2238, %v336_v59   ;;  %v350_v59 = vld [vmem:[%s3034_s7 + $0xc0] sm:$0xff] }
  0x66   : >> { %1978 = vmatmul.mubr.msk.f32.gmra.mrb[10].mxu0 %vm554_vm0, %v4091_v5  ;;  %2007 = vmatmul.mubr.msk.f32.gmra.mrb[10].mxu1 %vm554_vm0, %v4070_v34 }
  0x67   : >> { %769 = vmatprep.mubr.f32.mxu0 %v4097_v27  ;;  %943 = vmatprep.mubr.f32.mxu1 %v4097_v27 }
  0x68   : >> { %1358 = vperm.xlu1 %2239, %v4103_v43   ;;  %421 = vperm.xlu0 %2238, %v337_v28   ;;  %v351_v28 = vld [vmem:[%s3034_s7 + $0xc8] sm:$0xff] }
  0x6a   : >> { %1979 = vmatmul.mubr.msk.f32.gmra.mrb[12].mxu0 %vm554_vm0, %v4090_v6  ;;  %2008 = vmatmul.mubr.msk.f32.gmra.mrb[12].mxu1 %vm554_vm0, %v4069_v35 }
  0x6b   : >> { %775 = vmatprep.mubr.f32.mxu0 %v4097_v27  ;;  %949 = vmatprep.mubr.f32.mxu1 %v4097_v27 }
  0x6c   : >> { %1363 = vperm.xlu1 %2239, %v4104_v44   ;;  %426 = vperm.xlu0 %2238, %v338_v63   ;;  %v4117_v63 = vld [vmem:[#allocation26_spill] sm:$0xff] }
  0x6e   : >> { %1980 = vmatmul.mubr.msk.f32.gmra.mrb[14].mxu0 %vm554_vm0, %v4089_v7  ;;  %2009 = vmatmul.mubr.msk.f32.gmra.mrb[14].mxu1 %vm554_vm0, %v4068_v36 }
  0x6f   : >> { %781 = vmatprep.mubr.f32.mxu0 %v4097_v27  ;;  %955 = vmatprep.mubr.f32.mxu1 %v4097_v27 }
  0x70   : >> { %1368 = vperm.xlu1 %2239, %v4105_v45   ;;  %431 = vperm.xlu0 %2238, %v339_v60   ;;  %v4118_v60 = vld [vmem:[#allocation27_spill] sm:$0xff] }
  0x72   : >> { %1981 = vmatmul.mubr.msk.f32.gmra.mrb[16].mxu0 %vm554_vm0, %v4088_v8  ;;  %2010 = vmatmul.mubr.msk.f32.gmra.mrb[16].mxu1 %vm554_vm0, %v4067_v37 }
  0x73   : >> { %787 = vmatprep.mubr.f32.mxu0 %v4097_v27  ;;  %2105 = vmatprep.mubr.msk.f32.mxu1 %vm554_vm0, %v4096_v0 }
  0x74   : >> { %1373 = vperm.xlu1 %2239, %v4106_v46   ;;  %436 = vperm.xlu0 %2238, %v340_v62   ;;  %v4119_v62 = vld [vmem:[#allocation62_spill] sm:$0xff] }
  0x76   : >> { %1982 = vmatmul.mubr.msk.f32.gmra.mrb[18].mxu0 %vm554_vm0, %v4087_v9  ;;  %2106 = vmatmul.mubr.msk.f32.vlgmr.msra.gmra.mrb[18].mxu1 %vm554_vm0, %v4095_v1  ;;  %v4135_v1 = vld [vmem:[#allocation72_spill] sm:$0xff] }
  0x77   : >> { %793 = vmatprep.mubr.f32.mxu0 %v4097_v27  ;;  %2108 = vmatprep.mubr.msk.f32.mxu1 %vm554_vm0, %v4094_v2  ;;  %v363_v2 = vld [vmem:[%s3034_s7 + $0x128] sm:$0xf] }
  0x78   : >> { %1378 = vperm.xlu1 %2239, %v4107_v47   ;;  %441 = vperm.xlu0 %2238, %v341_v26   ;;  %v352_v26 = vld [vmem:[%s3034_s7 + $0xd0] sm:$0xff] }
  0x7a   : >> { %1983 = vmatmul.mubr.msk.f32.gmra.mrb[20].mxu0 %vm554_vm0, %v4086_v10  ;;  %2109 = vmatmul.mubr.msk.f32.gmra.mrb[20].mxu1 %vm554_vm0, %v4093_v3 }
  0x7b   : >> { %799 = vmatprep.mubr.f32.mxu0 %v4097_v27  ;;  %2111 = vmatprep.mubr.msk.f32.mxu1 %vm554_vm0, %v4092_v4  ;;  %v4137_v4 = vld [vmem:[#allocation73_spill] sm:$0xff] }
  0x7c   : >> { %1383 = vperm.xlu1 %2239, %v4108_v48   ;;  %446 = vperm.xlu0 %2238, %v342_v61   ;;  %v4120_v61 = vld [vmem:[#allocation28_spill] sm:$0xff] }
  0x7e   : >> { %1984 = vmatmul.mubr.msk.f32.gmra.mrb[22].mxu0 %vm554_vm0, %v4085_v11  ;;  %2112 = vmatmul.mubr.msk.f32.gmra.mrb[22].mxu1 %vm554_vm0, %v4091_v5 }
  0x7f   : >> { %805 = vmatprep.mubr.f32.mxu0 %v4097_v27  ;;  %2114 = vmatprep.mubr.msk.f32.mxu1 %vm554_vm0, %v4090_v6  ;;  %v4139_v6 = vld [vmem:[#allocation75_spill] sm:$0xff] }
  0x80   : >> { %1388 = vperm.xlu1 %2239, %v4109_v49   ;;  %451 = vperm.xlu0 %2238, %v343_v23   ;;  %v4121_v23 = vld [vmem:[#allocation29_spill] sm:$0xff] }
  0x82   : >> { %1985 = vmatmul.mubr.msk.f32.gmra.mrb[24].mxu0 %vm554_vm0, %v4084_v12  ;;  %2115 = vmatmul.mubr.msk.f32.gmra.mrb[24].mxu1 %vm554_vm0, %v4089_v7 }
  0x83   : >> { %811 = vmatprep.mubr.f32.mxu0 %v4097_v27  ;;  %2117 = vmatprep.mubr.msk.f32.mxu1 %vm554_vm0, %v4088_v8  ;;  %v4141_v8 = vld [vmem:[#allocation77_spill] sm:$0xff] }
  0x84   : >> { %1393 = vperm.xlu1 %2239, %v4110_v50   ;;  %456 = vperm.xlu0 %2238, %v344_v24   ;;  %v4122_v24 = vld [vmem:[#allocation63_spill] sm:$0xff] }
  0x86   : >> { %1986 = vmatmul.mubr.msk.f32.gmra.mrb[26].mxu0 %vm554_vm0, %v4083_v13  ;;  %2118 = vmatmul.mubr.msk.f32.gmra.mrb[26].mxu1 %vm554_vm0, %v4087_v9 }
  0x87   : >> { %817 = vmatprep.mubr.f32.mxu0 %v4097_v27  ;;  %2120 = vmatprep.mubr.msk.f32.mxu1 %vm554_vm0, %v4086_v10  ;;  %v4143_v10 = vld [vmem:[#allocation79_spill] sm:$0xff] }
  0x88   : >> { %1398 = vperm.xlu1 %2239, %v4111_v51   ;;  %461 = vperm.xlu0 %2238, %v345_v22   ;;  %v353_v22 = vld [vmem:[%s3034_s7 + $0xd8] sm:$0xff] }
  0x8a   : >> { %1987 = vmatmul.mubr.msk.f32.gmra.mrb[28].mxu0 %vm554_vm0, %v4082_v14  ;;  %2121 = vmatmul.mubr.msk.f32.gmra.mrb[28].mxu1 %vm554_vm0, %v4085_v11 }
  0x8b   : >> { %823 = vmatprep.mubr.f32.mxu0 %v4097_v27  ;;  %2123 = vmatprep.mubr.msk.f32.mxu1 %vm554_vm0, %v4084_v12 }
  0x8c   : >> { %1403 = vperm.xlu1 %2239, %v4112_v52   ;;  %466 = vperm.xlu0 %2238, %v346_v25   ;;  %v4123_v25 = vld [vmem:[#allocation30_spill] sm:$0xff] }
  0x8e   : >> { %1988 = vmatmul.mubr.msk.f32.gmra.mrb[30].mxu0 %vm554_vm0, %v4081_v15  ;;  %2124 = vmatmul.mubr.msk.f32.gmra.mrb[30].mxu1 %vm554_vm0, %v4083_v13 }
  0x8f   : >> { %829 = vmatprep.mubr.f32.mxu0 %v4097_v27  ;;  %2126 = vmatprep.mubr.msk.f32.mxu1 %vm554_vm0, %v4082_v14 }
  0x90   : >> { %1408 = vperm.xlu1 %2239, %v4113_v53   ;;  %471 = vperm.xlu0 %2238, %v347_v57   ;;  %v4124_v57 = vld [vmem:[#allocation31_spill] sm:$0xff] }
  0x92   : >> { %1989 = vmatmul.mubr.msk.f32.gmra.mrb[32].mxu0 %vm554_vm0, %v4080_v16  ;;  %2127 = vmatmul.mubr.msk.f32.gmra.mrb[32].mxu1 %vm554_vm0, %v4081_v15 }
  0x93   : >> { %835 = vmatprep.mubr.f32.mxu0 %v4097_v27  ;;  %2129 = vmatprep.mubr.msk.f32.mxu1 %vm554_vm0, %v4080_v16 }
  0x94   : >> { %1413 = vperm.xlu1 %2239, %v4114_v54   ;;  %476 = vperm.xlu0 %2238, %v348_v58   ;;  %v4125_v58 = vld [vmem:[#allocation64_spill] sm:$0xff] }
  0x96   : >> { %1990 = vmatmul.mubr.msk.f32.gmra.mrb[34].mxu0 %vm554_vm0, %v4079_v17  ;;  %2130 = vmatmul.mubr.msk.f32.gmra.mrb[34].mxu1 %vm554_vm0, %v4079_v17 }
  0x97   : >> { %841 = vmatprep.mubr.f32.mxu0 %v4097_v27  ;;  %2132 = vmatprep.mubr.msk.f32.mxu1 %vm554_vm0, %v4078_v18 }
  0x98   : >> { %1418 = vperm.xlu1 %2239, %v4115_v55   ;;  %481 = vperm.xlu0 %2238, %v349_v21   ;;  %v354_v21 = vld [vmem:[%s3034_s7 + $0xe0] sm:$0xff] }
  0x9a   : >> { %1991 = vmatmul.mubr.msk.f32.gmra.mrb[36].mxu0 %vm554_vm0, %v4078_v18  ;;  %2133 = vmatmul.mubr.msk.f32.gmra.mrb[36].mxu1 %vm554_vm0, %v4077_v19 }
  0x9b   : >> { %847 = vmatprep.mubr.f32.mxu0 %v4097_v27  ;;  %2135 = vmatprep.mubr.msk.f32.mxu1 %vm554_vm0, %v4076_v20 }
  0x9c   : >> { %1423 = vperm.xlu1 %2239, %v4116_v56   ;;  %486 = vperm.xlu0 %2238, %v350_v59   ;;  %v4126_v59 = vld [vmem:[#allocation32_spill] sm:$0xff] }
  0x9e   : >> { %1992 = vmatmul.mubr.msk.f32.gmra.mrb[38].mxu0 %vm554_vm0, %v4077_v19  ;;  %2136 = vmatmul.mubr.msk.f32.gmra.mrb[38].mxu1 %vm554_vm0, %v4117_v63 }
  0x9f   : >> { %853 = vmatprep.mubr.f32.mxu0 %v4097_v27  ;;  %2138 = vmatprep.mubr.msk.f32.mxu1 %vm554_vm0, %v4118_v60 }
  0xa0   : >> { %1428 = vperm.xlu1 %2239, %v4119_v62   ;;  %491 = vperm.xlu0 %2238, %v351_v28   ;;  %v4127_v28 = vld [vmem:[#allocation33_spill] sm:$0xff] }
  0xa1   : >> { %v4128_v62 = vld [vmem:[#allocation65_spill] sm:$0xff] }
  0xa2   : >> { %1993 = vmatmul.mubr.msk.f32.gmra.mrb[40].mxu0 %vm554_vm0, %v4076_v20  ;;  %2139 = vmatmul.mubr.msk.f32.gmra.mrb[40].mxu1 %vm554_vm0, %v4120_v61 }
  0xa3   : >> { %859 = vmatprep.mubr.f32.mxu0 %v4097_v27  ;;  %2141 = vmatprep.mubr.msk.f32.mxu1 %vm554_vm0, %v4121_v23 }
  0xa4   : >> { %1433 = vperm.xlu1 %2239, %v4122_v24   ;;  %496 = vperm.xlu0 %2238, %v352_v26   ;;  %v355_v26 = vld [vmem:[%s3034_s7 + $0xe8] sm:$0xff]  ;;  %v4129_v24 = vld [vmem:[#allocation66_spill] sm:$0xff] }
  0xa6   : >> { %1994 = vmatmul.mubr.msk.f32.gmra.mrb[42].mxu0 %vm554_vm0, %v4117_v63  ;;  %2142 = vmatmul.mubr.msk.f32.gmra.mrb[42].mxu1 %vm554_vm0, %v4123_v25 }
  0xa7   : >> { %865 = vmatprep.mubr.f32.mxu0 %v4097_v27  ;;  %2144 = vmatprep.mubr.msk.f32.mxu1 %vm554_vm0, %v4124_v57 }
  0xa8   : >> { %1438 = vperm.xlu1 %2239, %v4125_v58   ;;  %501 = vperm.xlu0 %2238, %v353_v22   ;;  %v356_v22 = vld [vmem:[%s3034_s7 + $0xf0] sm:$0xff]  ;;  %v4130_v58 = vld [vmem:[#allocation67_spill] sm:$0xff] }
  0xaa   : >> { %1995 = vmatmul.mubr.msk.f32.gmra.mrb[44].mxu0 %vm554_vm0, %v4118_v60  ;;  %2145 = vmatmul.mubr.msk.f32.gmra.mrb[44].mxu1 %vm554_vm0, %v4126_v59 }
  0xab   : >> { %871 = vmatprep.mubr.f32.mxu0 %v4097_v27  ;;  %2147 = vmatprep.mubr.msk.f32.mxu1 %vm554_vm0, %v4127_v28 }
  0xac   : >> { %1443 = vperm.xlu1 %2239, %v4128_v62   ;;  %506 = vperm.xlu0 %2238, %v354_v21   ;;  %v357_v21 = vld [vmem:[%s3034_s7 + $0xf8] sm:$0xff]  ;;  %v4131_v62 = vld [vmem:[#allocation68_spill] sm:$0xff] }
  0xae   : >> { %1996 = vmatmul.mubr.msk.f32.gmra.mrb[46].mxu0 %vm554_vm0, %v4120_v61  ;;  %2148 = vmatmul.mubr.msk.f32.gmra.mrb[46].mxu1 %vm554_vm0, %v4075_v29 }
  0xaf   : >> { %877 = vmatprep.mubr.f32.mxu0 %v4097_v27  ;;  %2150 = vmatprep.mubr.msk.f32.mxu1 %vm554_vm0, %v4074_v30 }
  0xb0   : >> { %1448 = vperm.xlu1 %2239, %v4129_v24   ;;  %511 = vperm.xlu0 %2238, %v355_v26   ;;  %v358_v26 = vld [vmem:[%s3034_s7 + $0x100] sm:$0xff]  ;;  %v4132_v24 = vld [vmem:[#allocation69_spill] sm:$0xff] }
  0xb2   : >> { %1997 = vmatmul.mubr.msk.f32.gmra.mrb[48].mxu0 %vm554_vm0, %v4121_v23  ;;  %2151 = vmatmul.mubr.msk.f32.gmra.mrb[48].mxu1 %vm554_vm0, %v4073_v31 }
  0xb3   : >> { %883 = vmatprep.mubr.f32.mxu0 %v4097_v27  ;;  %2153 = vmatprep.mubr.msk.f32.mxu1 %vm554_vm0, %v4072_v32 }
  0xb4   : >> { %1453 = vperm.xlu1 %2239, %v4130_v58   ;;  %516 = vperm.xlu0 %2238, %v356_v22   ;;  %v359_v22 = vld [vmem:[%s3034_s7 + $0x108] sm:$0xff]  ;;  %v4133_v58 = vld [vmem:[#allocation70_spill] sm:$0xff] }
  0xb6   : >> { %1998 = vmatmul.mubr.msk.f32.gmra.mrb[50].mxu0 %vm554_vm0, %v4123_v25  ;;  %2154 = vmatmul.mubr.msk.f32.gmra.mrb[50].mxu1 %vm554_vm0, %v4071_v33 }
  0xb7   : >> { %889 = vmatprep.mubr.f32.mxu0 %v4097_v27  ;;  %2156 = vmatprep.mubr.msk.f32.mxu1 %vm554_vm0, %v4070_v34 }
  0xb8   : >> { %1458 = vperm.xlu1 %2239, %v4131_v62   ;;  %521 = vperm.xlu0 %2238, %v357_v21   ;;  %v360_v21 = vld [vmem:[%s3034_s7 + $0x110] sm:$0xff]  ;;  %v4134_v62 = vld [vmem:[#allocation71_spill] sm:$0xff] }
  0xba   : >> { %1999 = vmatmul.mubr.msk.f32.gmra.mrb[52].mxu0 %vm554_vm0, %v4124_v57  ;;  %2157 = vmatmul.mubr.msk.f32.gmra.mrb[52].mxu1 %vm554_vm0, %v4069_v35 }
  0xbb   : >> { %895 = vmatprep.mubr.f32.mxu0 %v4097_v27  ;;  %2159 = vmatprep.mubr.msk.f32.mxu1 %vm554_vm0, %v4068_v36 }
  0xbc   : >> { %1463 = vperm.xlu1 %2239, %v4132_v24   ;;  %526 = vperm.xlu0 %2238, %v358_v26   ;;  %v361_v26 = vld [vmem:[%s3034_s7 + $0x118] sm:$0xff] }
  0xbe   : >> { %2000 = vmatmul.mubr.msk.f32.gmra.mrb[54].mxu0 %vm554_vm0, %v4126_v59  ;;  %2160 = vmatmul.mubr.msk.f32.gmra.mrb[54].mxu1 %vm554_vm0, %v4067_v37 }
  0xbf   : >> { %901 = vmatprep.mubr.f32.mxu0 %v4097_v27  ;;  %v362_v27 = vld [vmem:[%s3034_s7 + $0x120] sm:$0xff] }
  0xc0   : >> { %1468 = vperm.xlu1 %2239, %v4133_v58   ;;  %531 = vperm.xlu0 %2238, %v359_v22  }
  0xc2   : >> { %2001 = vmatmul.mubr.msk.f32.gmra.mrb[56].mxu0 %vm554_vm0, %v4127_v28 }
  0xc4   : >> { %1473 = vperm.xlu1 %2239, %v4134_v62   ;;  %536 = vperm.xlu0 %2238, %v360_v21   ;;  %v4136_v21 = vld [vmem:[#allocation74_spill] sm:$0xff] }
  0xc6   : >> { %v3304_v24 = vpop.permute.xlu1 %376  ;;  %v3306_v0 = vpop.permute.xlu0 %366 }
  0xc8   : >> { %1478 = vperm.xlu1 %2239, %v4135_v1   ;;  %541 = vperm.xlu0 %2238, %v361_v26   ;;  %v4138_v26 = vld [vmem:[#allocation76_spill] sm:$0xff] }
  0xcb   : >> { %v3311_v3 = vpop.permute.xlu1 %381  ;;  %v3313_v22 = vpop.permute.xlu0 %371 }
  0xcc   : >> { %551 = vperm.xlu1 %2239, %v363_v2   ;;  %546 = vperm.xlu0 %2238, %v362_v27   ;;  %v4140_v27 = vld [vmem:[#allocation78_spill] sm:$0xff] }
  0xcf   : >> { %v3315_v58 = vpop.permute.xlu1 %391  ;;  %v3317_v62 = vpop.permute.xlu0 %386 }
  0xd0   : >> { %1488 = vperm.xlu1 %2239, %v4136_v21   ;;  %1483 = vperm.xlu0 %2238, %v4137_v4   ;;  %v4142_v4 = vld [vmem:[#allocation80_spill] sm:$0xff] }
  0xd3   : >> { %v3321_v5 = vpop.permute.xlu1 %401  ;;  %v3323_v1 = vpop.permute.xlu0 %396 }
  0xd4   : >> { %1498 = vperm.xlu1 %2239, %v4138_v26   ;;  %1493 = vperm.xlu0 %2238, %v4139_v6  }
  0xd7   : >> { %v3327_v7 = vpop.permute.xlu1 %1338  ;;  %v3329_v2 = vpop.permute.xlu0 %1333 }
  0xd8   : >> { %1508 = vperm.xlu1 %2239, %v4140_v27   ;;  %1503 = vperm.xlu0 %2238, %v4141_v8  }
  0xdb   : >> { %v3333_v9 = vpop.permute.xlu1 %1343  ;;  %v3335_v21 = vpop.permute.xlu0 %406 }
  0xdc   : >> { %1518 = vperm.xlu1 %2239, %v4142_v4   ;;  %1513 = vperm.xlu0 %2238, %v4143_v10  }
  0xdf   : >> { %v3339_v11 = vpop.permute.xlu1 %1348  ;;  %v3341_v26 = vpop.permute.xlu0 %411 }
  0xe3   : >> { %v3343_v6 = vpop.permute.xlu1 %1353  ;;  %v3345_v12 = vpop.permute.xlu0 %416 }
  0xe7   : >> { %v3347_v13 = vpop.permute.xlu1 %1358  ;;  %v3349_v27 = vpop.permute.xlu0 %421 }
  0xeb   : >> { %v3351_v8 = vpop.permute.xlu0 %426  ;;  %v3353_v14 = vpop.permute.xlu1 %1363 }
  0xef   : >> { %v3355_v15 = vpop.permute.xlu0 %431  ;;  %v3357_v4 = vpop.permute.xlu1 %1368 }
  0xf3   : >> { %v3359_v10 = vpop.permute.xlu0 %436  ;;  %v3363_v17 = vpop.permute.xlu1 %1373 }
  0xf7   : >> { %v3361_v16 = vpop.permute.xlu0 %441  ;;  %v3367_v19 = vpop.permute.xlu1 %1378 }
  0xfb   : >> { %v3365_v18 = vpop.permute.xlu0 %446  ;;  %v3373_v25 = vpop.permute.xlu1 %1383 }
  0xff   : >> { %v3369_v20 = vpop.permute.xlu0 %451  ;;  %v3377_v29 = vpop.permute.xlu1 %1388 }
 0x103   : >> { %v3371_v23 = vpop.permute.xlu0 %456  ;;  %v3383_v32 = vpop.permute.xlu1 %1393 }
 0x107   : >> { %v3375_v28 = vpop.permute.xlu0 %461  ;;  %v3387_v34 = vpop.permute.xlu1 %1398 }
 0x10b   : >> { %v3379_v30 = vpop.permute.xlu0 %466  ;;  %v3393_v37 = vpop.permute.xlu1 %1403 }
 0x10c   : >> { %4144 = vst [vmem:[#allocation81_spill] sm:$0xff] %v3379_v30 }
 0x10f   : >> { %v3381_v31 = vpop.permute.xlu0 %471  ;;  %v3397_v39 = vpop.permute.xlu1 %1408 }
 0x110   : >> { %4145 = vst [vmem:[#allocation82_spill] sm:$0xff] %v3381_v31 }
 0x113   : >> { %v3385_v33 = vpop.permute.xlu0 %476  ;;  %v3407_v47 = vpop.permute.xlu1 %1413 }
 0x114   : >> { %4146 = vst [vmem:[#allocation83_spill] sm:$0xff] %v3385_v33 }
 0x117   : >> { %v3389_v35 = vpop.permute.xlu0 %481 }
 0x118   : >> { %4147 = vst [vmem:[#allocation84_spill] sm:$0xff] %v3389_v35 }
 0x11b   : >> { %v3391_v36 = vpop.permute.xlu0 %486 }
 0x11c   : >> { %4148 = vst [vmem:[#allocation85_spill] sm:$0xff] %v3391_v36 }
 0x11f   : >> { %v3395_v38 = vpop.permute.xlu0 %491 }
 0x120   : >> { %4149 = vst [vmem:[#allocation86_spill] sm:$0xff] %v3395_v38 }
 0x123   : >> { %v3399_v40 = vpop.permute.xlu0 %496 }
 0x124   : >> { %4150 = vst [vmem:[#allocation87_spill] sm:$0xff] %v3399_v40 }
 0x125   : >> { %v735_v41 = vpop.f32.mrb[0].mxu0  ;;  %v3401_v42 = vpop.f32.mrb[0].mxu1 }
 0x126   : >> { %v736_v43 = vadd.f32 %v735_v41, %v3306_v0  ;;  %v737_v44 = vpop.f32.mrb[1].mxu0  ;;  %v3404_v45 = vpop.f32.mrb[1].mxu1 }
 0x127   : >> { %v738_v46 = vadd.f32 %v737_v44, %v3306_v0  ;;  %v3415_v41 = vpop.permute.xlu0 %501 }
 0x128   : >> { %2240 = vtanh.f32 %v736_v43  ;;  %4151 = vst [vmem:[#allocation88_spill] sm:$0xff] %v3415_v41 }
 0x129   : >> { %v741_v48 = vpop.f32.mrb[2].mxu0  ;;  %v3409_v49 = vpop.f32.mrb[2].mxu1  ;;  %2242 = vtanh.f32 %v738_v46 }
 0x12a   : >> { %v742_v50 = vadd.f32 %v741_v48, %v3313_v22  ;;  %v743_v51 = vpop.f32.mrb[3].mxu0  ;;  %v3412_v52 = vpop.f32.mrb[3].mxu1 }
 0x12b   : >> { %v744_v53 = vadd.f32 %v743_v51, %v3313_v22  ;;  %v3423_v48 = vpop.permute.xlu1 %1418  ;;  %v3431_v61 = vpop.permute.xlu0 %506 }
 0x12c   : >> { %2244 = vtanh.f32 %v742_v50  ;;  %4152 = vst [vmem:[#allocation89_spill] sm:$0xff] %v3423_v48  ;;  %4155 = vst [vmem:[#allocation92_spill] sm:$0xff] %v3431_v61 }
 0x12d   : >> { %2246 = vtanh.f32 %v744_v53  ;;  %v747_v54 = vpop.f32.mrb[4].mxu0  ;;  %v3417_v44 = vpop.f32.mrb[4].mxu1 }
 0x12e   : >> { %v748_v55 = vadd.f32 %v747_v54, %v3304_v24  ;;  %v749_v56 = vpop.f32.mrb[5].mxu0  ;;  %v3420_v57 = vpop.f32.mrb[5].mxu1 }
 0x12f   : >> { %v750_v43 = vadd.f32 %v749_v56, %v3304_v24  ;;  %v3441_v61 = vpop.permute.xlu1 %1423 }
 0x130   : >> { %2248 = vtanh.f32 %v748_v55  ;;  %4158 = vst [vmem:[#allocation95_spill] sm:$0xff] %v3441_v61 }
 0x131   : >> { %2250 = vtanh.f32 %v750_v43  ;;  %v753_v46 = vpop.f32.mrb[6].mxu0  ;;  %v3425_v51 = vpop.f32.mrb[6].mxu1 }
 0x132   : >> { %4153 = vst [vmem:[#allocation90_spill] sm:$0xff] %v3425_v51  ;;  %v754_v50 = vadd.f32 %v753_v46, %v3311_v3  ;;  %v755_v53 = vpop.f32.mrb[7].mxu0  ;;  %v3428_v59 = vpop.f32.mrb[7].mxu1 }
 0x133   : >> { %4154 = vst [vmem:[#allocation91_spill] sm:$0xff] %v3428_v59  ;;  %v756_v60 = vadd.f32 %v755_v53, %v3311_v3  ;;  %v2241_v54 = vpop.eup %2240  ;;  %v3462_v30 = vpop.permute.xlu1 %1428 }
 0x134   : >> { %2252 = vtanh.f32 %v754_v50  ;;  %v2243_v63 = vpop.eup %2242  ;;  %v1521_v59 = vmul.f32 %v2241_v54, %v3329_v2  ;;  %4163 = vst [vmem:[#allocation100_spill] sm:$0xff] %v3462_v30 }
 0x135   : >> { %2254 = vtanh.f32 %v756_v60  ;;  %v759_v56 = vpop.f32.mrb[8].mxu0  ;;  %v3433_v40 = vpop.f32.mrb[8].mxu1  ;;  %v1522_v60 = vmul.f32 %v2243_v63, %v3329_v2 }
 0x136   : >> { %4156 = vst [vmem:[#allocation93_spill] sm:$0xff] %v3433_v40  ;;  %v2245_v55 = vpop.eup %2244  ;;  %v760_v43 = vadd.f32 %v759_v56, %v3317_v62  ;;  %v761_v51 = vpop.f32.mrb[9].mxu0 }
 0x137   : >> { %v3436_v41 = vpop.f32.mrb[9].mxu1  ;;  %v2247_v46 = vpop.eup %2246  ;;  %v1524_v53 = vmul.f32 %v2245_v55, %v3327_v7  ;;  %v762_v36 = vadd.f32 %v761_v51, %v3317_v62 }
 0x138   : >> { %4157 = vst [vmem:[#allocation94_spill] sm:$0xff] %v3436_v41  ;;  %v1525_v50 = vmul.f32 %v2247_v46, %v3327_v7  ;;  %2256 = vtanh.f32 %v760_v43  ;;  %v3453_v43 = vpop.permute.xlu0 %511 }
 0x139   : >> { %v1635_v40 = vadd.f32 %v1524_v53, %v1521_v59  ;;  %2258 = vtanh.f32 %v762_v36  ;;  %v765_v56 = vpop.f32.mrb[10].mxu0  ;;  %v3445_v38 = vpop.f32.mrb[10].mxu1 }
 0x13a   : >> { %4159 = vst [vmem:[#allocation96_spill] sm:$0xff] %v3445_v38  ;;  %v2249_v41 = vpop.eup %2248  ;;  %v1680_v33 = vadd.f32 %v1525_v50, %v1522_v60  ;;  %v766_v54 = vadd.f32 %v765_v56, %v3315_v58  ;;  %v767_v35 = vpop.f32.mrb[11].mxu0 }
 0x13b   : >> { %v3448_v55 = vpop.f32.mrb[11].mxu1  ;;  %v2251_v51 = vpop.eup %2250  ;;  %v1527_v61 = vmul.f32 %v2249_v41, %v3333_v9  ;;  %v768_v63 = vadd.f32 %v767_v35, %v3315_v58 }
 0x13c   : >> { %4160 = vst [vmem:[#allocation97_spill] sm:$0xff] %v3448_v55  ;;  %v1528_v46 = vmul.f32 %v2251_v51, %v3333_v9  ;;  %2260 = vtanh.f32 %v766_v54  ;;  %v3472_v48 = vpop.permute.xlu0 %516 }
 0x13d   : >> { %v1636_v36 = vadd.f32 %v1635_v40, %v1527_v61  ;;  %2262 = vtanh.f32 %v768_v63  ;;  %v771_v59 = vpop.f32.mrb[12].mxu0  ;;  %v3455_v53 = vpop.f32.mrb[12].mxu1 }
 0x13e   : >> { %4161 = vst [vmem:[#allocation98_spill] sm:$0xff] %v3455_v53  ;;  %v2253_v60 = vpop.eup %2252  ;;  %v1681_v50 = vadd.f32 %v1680_v33, %v1528_v46  ;;  %v772_v56 = vadd.f32 %v771_v59, %v3323_v1  ;;  %v773_v55 = vpop.f32.mrb[13].mxu0 }
 0x13f   : >> { %v3458_v38 = vpop.f32.mrb[13].mxu1  ;;  %v2255_v41 = vpop.eup %2254  ;;  %v1530_v35 = vmul.f32 %v2253_v60, %v3339_v11  ;;  %v774_v51 = vadd.f32 %v773_v55, %v3323_v1 }
 0x140   : >> { %4162 = vst [vmem:[#allocation99_spill] sm:$0xff] %v3458_v38  ;;  %v1531_v40 = vmul.f32 %v2255_v41, %v3339_v11  ;;  %2264 = vtanh.f32 %v772_v56 }
 0x141   : >> { %v1637_v61 = vadd.f32 %v1636_v36, %v1530_v35  ;;  %2266 = vtanh.f32 %v774_v51  ;;  %v777_v54 = vpop.f32.mrb[14].mxu0  ;;  %v3465_v63 = vpop.f32.mrb[14].mxu1 }
 0x142   : >> { %4164 = vst [vmem:[#allocation101_spill] sm:$0xff] %v3465_v63  ;;  %v2257_v33 = vpop.eup %2256  ;;  %v1682_v46 = vadd.f32 %v1681_v50, %v1531_v40  ;;  %v778_v59 = vadd.f32 %v777_v54, %v3321_v5  ;;  %v779_v38 = vpop.f32.mrb[15].mxu0 }
 0x143   : >> { %v3468_v53 = vpop.f32.mrb[15].mxu1  ;;  %v2259_v60 = vpop.eup %2258  ;;  %v1533_v55 = vmul.f32 %v2257_v33, %v3343_v6  ;;  %v780_v30 = vadd.f32 %v779_v38, %v3321_v5  ;;  %v910_v38 = vadd.f32 %v3401_v42, %v3453_v43 }
 0x144   : >> { %4165 = vst [vmem:[#allocation102_spill] sm:$0xff] %v3468_v53  ;;  %v1534_v36 = vmul.f32 %v2259_v60, %v3343_v6  ;;  %2268 = vtanh.f32 %v778_v59 }
 0x145   : >> { %v1638_v56 = vadd.f32 %v1637_v61, %v1533_v55  ;;  %2270 = vtanh.f32 %v780_v30  ;;  %v783_v41 = vpop.f32.mrb[16].mxu0  ;;  %v3475_v35 = vpop.f32.mrb[16].mxu1  ;;  %v912_v30 = vadd.f32 %v3404_v45, %v3453_v43 }
 0x146   : >> { %4166 = vst [vmem:[#allocation103_spill] sm:$0xff] %v3475_v35  ;;  %v2261_v50 = vpop.eup %2260  ;;  %v1683_v51 = vadd.f32 %v1682_v46, %v1534_v36  ;;  %v784_v40 = vadd.f32 %v783_v41, %v3335_v21  ;;  %v785_v54 = vpop.f32.mrb[17].mxu0 }
 0x147   : >> { %v3478_v53 = vpop.f32.mrb[17].mxu1  ;;  %v2263_v33 = vpop.eup %2262  ;;  %v1536_v63 = vmul.f32 %v2261_v50, %v3347_v13  ;;  %v786_v59 = vadd.f32 %v785_v54, %v3335_v21 }
 0x148   : >> { %4167 = vst [vmem:[#allocation104_spill] sm:$0xff] %v3478_v53  ;;  %v3484_v61 = vpop.permute.xlu1 %1433  ;;  %v1537_v46 = vmul.f32 %v2263_v33, %v3347_v13  ;;  %2272 = vtanh.f32 %v784_v40 }
 0x149   : >> { %4168 = vst [vmem:[#allocation105_spill] sm:$0xff] %v3484_v61  ;;  %v1639_v60 = vadd.f32 %v1638_v56, %v1536_v63  ;;  %2274 = vtanh.f32 %v786_v59  ;;  %v789_v55 = vpop.f32.mrb[18].mxu0  ;;  %v2107_v36 = vpop.f32.mrb[18].mxu1 }
 0x14a   : >> { %v2265_v41 = vpop.eup %2264  ;;  %v1684_v53 = vadd.f32 %v1683_v51, %v1537_v46  ;;  %v790_v42 = vadd.f32 %v789_v55, %v3341_v26  ;;  %v1034_v50 = vadd.f32 %v2107_v36, %v3313_v22  ;;  %v791_v35 = vpop.f32.mrb[19].mxu0  ;;  %2276 = vtanh.f32 %v910_v38 }
 0x14b   : >> { %v1028_v54 = vpop.f32.mrb[19].mxu1  ;;  %v2267_v31 = vpop.eup %2266  ;;  %v1539_v61 = vmul.f32 %v2265_v41, %v3353_v14  ;;  %v792_v45 = vadd.f32 %v791_v35, %v3341_v26  ;;  %2278 = vtanh.f32 %v912_v30  ;;  %v916_v51 = vadd.f32 %v3409_v49, %v3472_v48 }
 0x14c   : >> { %v1029_v40 = vadd.f32 %v1028_v54, %v3306_v0  ;;  %v3494_v63 = vpop.permute.xlu0 %521  ;;  %v1540_v56 = vmul.f32 %v2267_v31, %v3353_v14  ;;  %2280 = vtanh.f32 %v790_v42  ;;  %v918_v38 = vadd.f32 %v3412_v52, %v3472_v48 }
 0x14d   : >> { %v1640_v33 = vadd.f32 %v1639_v60, %v1539_v61  ;;  %v795_v22 = vpop.f32.mrb[20].mxu0  ;;  %v2110_v59 = vpop.f32.mrb[20].mxu1  ;;  %2282 = vtanh.f32 %v1034_v50  ;;  %v922_v31 = vadd.f32 %v3417_v44, %v3494_v63  ;;  %v924_v52 = vadd.f32 %v3420_v57, %v3494_v63 }
 0x14e   : >> { %v2269_v46 = vpop.eup %2268  ;;  %v1685_v55 = vadd.f32 %v1684_v53, %v1540_v56  ;;  %v1044_v0 = vadd.f32 %v2110_v59, %v3311_v3  ;;  %v797_v35 = vpop.f32.mrb[21].mxu0  ;;  %2284 = vtanh.f32 %v792_v45  ;;  %v796_v41 = vadd.f32 %v795_v22, %v3345_v12 }
 0x14f   : >> { %v1038_v30 = vpop.f32.mrb[21].mxu1  ;;  %v2271_v36 = vpop.eup %2270  ;;  %v1542_v49 = vmul.f32 %v2269_v46, %v3357_v4  ;;  %2286 = vtanh.f32 %v1029_v40  ;;  %v798_v46 = vadd.f32 %v797_v35, %v3345_v12 }
 0x150   : >> { %v1039_v61 = vadd.f32 %v1038_v30, %v3304_v24  ;;  %v3506_v60 = vpop.permute.xlu1 %1438  ;;  %v1543_v53 = vmul.f32 %v2271_v36, %v3357_v4  ;;  %2288 = vtanh.f32 %v916_v51 }
 0x151   : >> { %v1641_v3 = vadd.f32 %v1640_v33, %v1542_v49  ;;  %v801_v42 = vpop.f32.mrb[22].mxu0  ;;  %v2113_v50 = vpop.f32.mrb[22].mxu1  ;;  %2290 = vtanh.f32 %v918_v38 }
 0x152   : >> { %v2273_v44 = vpop.eup %2272  ;;  %v1686_v54 = vadd.f32 %v1685_v55, %v1543_v53  ;;  %v1054_v45 = vadd.f32 %v2113_v50, %v3315_v58  ;;  %v803_v24 = vpop.f32.mrb[23].mxu0  ;;  %2292 = vtanh.f32 %v922_v31  ;;  %v802_v22 = vadd.f32 %v801_v42, %v3349_v27 }
 0x153   : >> { %v1048_v56 = vpop.f32.mrb[23].mxu1  ;;  %v2275_v59 = vpop.eup %2274  ;;  %v1545_v57 = vmul.f32 %v2273_v44, %v3363_v17  ;;  %2294 = vtanh.f32 %v924_v52  ;;  %v804_v52 = vadd.f32 %v803_v24, %v3349_v27 }
 0x154   : >> { %v1546_v40 = vmul.f32 %v2275_v59, %v3363_v17  ;;  %v3516_v51 = vpop.eup %2276  ;;  %2296 = vtanh.f32 %v796_v41  ;;  %v3523_v50 = vpop.permute.xlu1 %1443  ;;  %v1049_v41 = vadd.f32 %v1048_v56, %v3317_v62 }
 0x155   : >> { %v1642_v33 = vadd.f32 %v1641_v3, %v1545_v57  ;;  %v807_v38 = vpop.f32.mrb[24].mxu0  ;;  %v2116_v55 = vpop.f32.mrb[24].mxu1  ;;  %2298 = vtanh.f32 %v1044_v0 }
 0x156   : >> { %v3519_v58 = vpop.eup %2278  ;;  %v1687_v30 = vadd.f32 %v1686_v54, %v1546_v40  ;;  %v1064_v36 = vadd.f32 %v2116_v55, %v3321_v5  ;;  %v809_v31 = vpop.f32.mrb[25].mxu0  ;;  %2300 = vtanh.f32 %v798_v46  ;;  %v808_v5 = vadd.f32 %v807_v38, %v3351_v8 }
 0x157   : >> { %v1058_v49 = vpop.f32.mrb[25].mxu1  ;;  %v2281_v35 = vpop.eup %2280  ;;  %2302 = vtanh.f32 %v1039_v61 }
 0x158   : >> { %v2283_v53 = vpop.eup %2282  ;;  %v1548_v3 = vmul.f32 %v2281_v35, %v3367_v19  ;;  %2304 = vtanh.f32 %v802_v22 }
 0x159   : >> { %v2285_v42 = vpop.eup %2284  ;;  %v1526_v0 = vmul.f32 %v2283_v53, %v3327_v7  ;;  %v813_v44 = vpop.f32.mrb[26].mxu0  ;;  %2306 = vtanh.f32 %v1054_v45  ;;  %v810_v7 = vadd.f32 %v809_v31, %v3351_v8 }
 0x15a   : >> { %v2119_v54 = vpop.f32.mrb[26].mxu1  ;;  %v2287_v59 = vpop.eup %2286  ;;  %v1643_v57 = vadd.f32 %v1642_v33, %v1548_v3  ;;  %v1549_v24 = vmul.f32 %v2285_v42, %v3367_v19  ;;  %2308 = vtanh.f32 %v804_v52  ;;  %v1059_v33 = vadd.f32 %v1058_v49, %v3323_v1 }
 0x15b   : >> { %v815_v46 = vpop.f32.mrb[27].mxu0  ;;  %v1068_v40 = vpop.f32.mrb[27].mxu1  ;;  %v1726_v61 = vsel %vm1724_vm1, %v1526_v0, 0.0  ;;  %v1523_v62 = vmul.f32 %v2287_v59, %v3329_v2  ;;  %2310 = vtanh.f32 %v1049_v41  ;;  %v814_v35 = vadd.f32 %v813_v44, %v3355_v15 }
 0x15c   : >> { %v3530_v55 = vpop.eup %2288  ;;  %v1688_v22 = vadd.f32 %v1687_v30, %v1549_v24  ;;  %2312 = vtanh.f32 %v808_v5  ;;  %v1074_v31 = vadd.f32 %v2119_v54, %v3341_v26  ;;  %v816_v1 = vadd.f32 %v815_v46, %v3355_v15  ;;  %v3547_v5 = vpop.permute.xlu1 %1448 }
 0x15d   : >> { %v3535_v56 = vpop.eup %2290  ;;  %v1725_v45 = vsel %vm1724_vm1, %v1523_v62, 0.0  ;;  %v819_v53 = vpop.f32.mrb[28].mxu0  ;;  %2314 = vtanh.f32 %v1064_v36  ;;  %v1069_v49 = vadd.f32 %v1068_v40, %v3335_v21 }
 0x15e   : >> { %v3538_v38 = vpop.eup %2292  ;;  %v2122_v3 = vpop.f32.mrb[28].mxu1  ;;  %v1727_v2 = vadd.f32 %v1726_v61, %v1725_v45  ;;  %2316 = vtanh.f32 %v810_v7  ;;  %v820_v59 = vadd.f32 %v819_v53, %v3359_v10 }
 0x15f   : >> { %v3542_v42 = vpop.eup %2294  ;;  %v821_v52 = vpop.f32.mrb[29].mxu0  ;;  %2318 = vtanh.f32 %v1059_v33  ;;  %v1084_v36 = vadd.f32 %v2122_v3, %v3349_v27 }
 0x160   : >> { %v1078_v30 = vpop.f32.mrb[29].mxu1  ;;  %v2297_v41 = vpop.eup %2296  ;;  %2320 = vtanh.f32 %v814_v35  ;;  %v822_v54 = vadd.f32 %v821_v52, %v3359_v10 }
 0x161   : >> { %v2299_v0 = vpop.eup %2298  ;;  %v1551_v44 = vmul.f32 %v2297_v41, %v3373_v25  ;;  %v1079_v46 = vadd.f32 %v1078_v30, %v3345_v12  ;;  %v825_v61 = vpop.f32.mrb[30].mxu0  ;;  %2322 = vtanh.f32 %v1074_v31 }
 0x162   : >> { %v2301_v24 = vpop.eup %2300  ;;  %v1532_v26 = vmul.f32 %v2299_v0, %v3339_v11  ;;  %v2125_v21 = vpop.f32.mrb[30].mxu1  ;;  %v826_v33 = vadd.f32 %v825_v61, %v3361_v16  ;;  %2324 = vtanh.f32 %v816_v1 }
 0x163   : >> { %v2303_v40 = vpop.eup %2302  ;;  %v1644_v62 = vadd.f32 %v1643_v57, %v1551_v44  ;;  %v1552_v7 = vmul.f32 %v2301_v24, %v3373_v25  ;;  %v827_v45 = vpop.f32.mrb[31].mxu0  ;;  %v1094_v35 = vadd.f32 %v2125_v21, %v3355_v15  ;;  %2326 = vtanh.f32 %v1069_v49 }
 0x164   : >> { %v1088_v53 = vpop.f32.mrb[31].mxu1  ;;  %v2305_v27 = vpop.eup %2304  ;;  %v1730_v3 = vsel %vm1724_vm1, %v1532_v26, 0.0  ;;  %v1529_v11 = vmul.f32 %v2303_v40, %v3333_v9  ;;  %v828_v57 = vadd.f32 %v827_v45, %v3361_v16  ;;  %2328 = vtanh.f32 %v820_v59 }
 0x165   : >> { %v2307_v12 = vpop.eup %2306  ;;  %v1689_v52 = vadd.f32 %v1688_v22, %v1552_v7  ;;  %v1554_v30 = vmul.f32 %v2305_v27, %v3377_v29  ;;  %v1089_v44 = vadd.f32 %v1088_v53, %v3351_v8  ;;  %v831_v24 = vpop.f32.mrb[32].mxu0  ;;  %2330 = vtanh.f32 %v1084_v36 }
 0x166   : >> { %v2309_v31 = vpop.eup %2308  ;;  %v1728_v41 = vsel %vm1724_vm1, %v1529_v11, 0.0  ;;  %v1538_v0 = vmul.f32 %v2307_v12, %v3347_v13  ;;  %v2128_v9 = vpop.f32.mrb[32].mxu1  ;;  %2332 = vtanh.f32 %v822_v54  ;;  %v832_v13 = vadd.f32 %v831_v24, %v3365_v18 }
 0x167   : >> { %v2311_v1 = vpop.eup %2310  ;;  %v1729_v26 = vadd.f32 %v1728_v41, %v1727_v2  ;;  %v1645_v15 = vadd.f32 %v1644_v62, %v1554_v30  ;;  %v1555_v22 = vmul.f32 %v2309_v31, %v3377_v29  ;;  %v833_v61 = vpop.f32.mrb[33].mxu0  ;;  %2334 = vtanh.f32 %v1079_v46 }
 0x168   : >> { %v1098_v49 = vpop.f32.mrb[33].mxu1  ;;  %v2313_v21 = vpop.eup %2312  ;;  %v1734_v40 = vsel %vm1724_vm1, %v1538_v0, 0.0  ;;  %v1535_v7 = vmul.f32 %v2311_v1, %v3343_v6  ;;  %2336 = vtanh.f32 %v826_v33  ;;  %v1104_v11 = vadd.f32 %v2128_v9, %v3361_v16 }
 0x169   : >> { %v2315_v59 = vpop.eup %2314  ;;  %v3569_v8 = vpop.permute.xlu1 %1453  ;;  %v1690_v45 = vadd.f32 %v1689_v52, %v1555_v22  ;;  %v1731_v53 = vadd.f32 %v1730_v3, %v1729_v26  ;;  %v1557_v2 = vmul.f32 %v2313_v21, %v3383_v32  ;;  %2338 = vtanh.f32 %v1094_v35 }
 0x16a   : >> { %v2317_v62 = vpop.eup %2316  ;;  %v1732_v36 = vsel %vm1724_vm1, %v1535_v7, 0.0  ;;  %v1544_v27 = vmul.f32 %v2315_v59, %v3357_v4  ;;  %v837_v6 = vpop.f32.mrb[34].mxu0  ;;  %2340 = vtanh.f32 %v828_v57  ;;  %v834_v4 = vadd.f32 %v833_v61, %v3365_v18 }
 0x16b   : >> { %v2131_v54 = vpop.f32.mrb[34].mxu1  ;;  %v2319_v12 = vpop.eup %2318  ;;  %v1733_v30 = vadd.f32 %v1732_v36, %v1731_v53  ;;  %v1646_v31 = vadd.f32 %v1645_v15, %v1557_v2  ;;  %v1558_v41 = vmul.f32 %v2317_v62, %v3383_v32  ;;  %2342 = vtanh.f32 %v1089_v44 }
 0x16c   : >> { %v839_v3 = vpop.f32.mrb[35].mxu0  ;;  %v1108_v52 = vpop.f32.mrb[35].mxu1  ;;  %v1738_v46 = vsel %vm1724_vm1, %v1544_v27, 0.0  ;;  %v1541_v24 = vmul.f32 %v2319_v12, %v3353_v14  ;;  %2344 = vtanh.f32 %v832_v13  ;;  %v1099_v22 = vadd.f32 %v1098_v49, %v3359_v10 }
 0x16d   : >> { %v2321_v0 = vpop.eup %2320  ;;  %v1691_v16 = vadd.f32 %v1690_v45, %v1558_v41  ;;  %v1735_v9 = vadd.f32 %v1734_v40, %v1733_v30  ;;  %v843_v21 = vpop.f32.mrb[36].mxu0  ;;  %2346 = vtanh.f32 %v1104_v11  ;;  %v1114_v30 = vadd.f32 %v2131_v54, %v3369_v20 }
 0x16e   : >> { %v2323_v33 = vpop.eup %2322  ;;  %v1560_v1 = vmul.f32 %v2321_v0, %v3387_v34  ;;  %v1736_v15 = vsel %vm1724_vm1, %v1541_v24, 0.0  ;;  %v2134_v7 = vpop.f32.mrb[36].mxu1  ;;  %2348 = vtanh.f32 %v834_v4  ;;  %v1109_v54 = vadd.f32 %v1108_v52, %v3365_v18 }
 0x16f   : >> { %v2325_v26 = vpop.eup %2324  ;;  %v1550_v35 = vmul.f32 %v2323_v33, %v3367_v19  ;;  %v1737_v57 = vadd.f32 %v1736_v15, %v1735_v9  ;;  %v845_v40 = vpop.f32.mrb[37].mxu0  ;;  %v838_v19 = vadd.f32 %v837_v6, %v3369_v20  ;;  %2350 = vtanh.f32 %v1099_v22 }
 0x170   : >> { %v2327_v14 = vpop.eup %2326  ;;  %v1647_v59 = vadd.f32 %v1646_v31, %v1560_v1  ;;  %v1561_v61 = vmul.f32 %v2325_v26, %v3387_v34  ;;  %v3584_v45 = vpop.f32.mrb[37].mxu1  ;;  %v1124_v52 = vadd.f32 %v2134_v7, %v3375_v28 }
 0x171   : >> { %v2329_v44 = vpop.eup %2328  ;;  %v1742_v53 = vsel %vm1724_vm1, %v1550_v35, 0.0  ;;  %v1547_v2 = vmul.f32 %v2327_v14, %v3363_v17  ;;  %v3589_v49 = vpop.permute.xlu1 %1458  ;;  %v1739_v62 = vadd.f32 %v1738_v46, %v1737_v57  ;;  %2352 = vtanh.f32 %v838_v19 }
 0x172   : >> { %v2331_v10 = vpop.eup %2330  ;;  %v1692_v13 = vadd.f32 %v1691_v16, %v1561_v61  ;;  %v1563_v36 = vmul.f32 %v2329_v44, %v3393_v37  ;;  %v849_v17 = vpop.f32.mrb[38].mxu0  ;;  %v840_v46 = vadd.f32 %v839_v3, %v3369_v20  ;;  %2354 = vtanh.f32 %v1114_v30 }
 0x173   : >> { %v2333_v27 = vpop.eup %2332  ;;  %v1740_v11 = vsel %vm1724_vm1, %v1547_v2, 0.0  ;;  %v1556_v12 = vmul.f32 %v2331_v10, %v3377_v29  ;;  %v2137_v31 = vpop.f32.mrb[38].mxu1  ;;  %v844_v14 = vadd.f32 %v843_v21, %v3371_v23  ;;  %v846_v21 = vadd.f32 %v845_v40, %v3371_v23 }
 0x174   : >> { %v2335_v41 = vpop.eup %2334  ;;  %v1741_v6 = vadd.f32 %v1740_v11, %v1739_v62  ;;  %v1648_v0 = vadd.f32 %v1647_v59, %v1563_v36  ;;  %v1564_v24 = vmul.f32 %v2333_v27, %v3393_v37  ;;  %v3597_v4 = vpop.f32.mrb[39].mxu0  ;;  %2356 = vtanh.f32 %v840_v46 }
 0x175   : >> { %v3599_v33 = vpop.f32.mrb[39].mxu1  ;;  %v2337_v16 = vpop.eup %2336  ;;  %v1746_v9 = vsel %vm1724_vm1, %v1556_v12, 0.0  ;;  %v1553_v29 = vmul.f32 %v2335_v41, %v3373_v25  ;;  %2358 = vtanh.f32 %v1109_v54 }
 0x176   : >> { %v2339_v1 = vpop.eup %2338  ;;  %v1693_v26 = vadd.f32 %v1692_v13, %v1564_v24  ;;  %v1743_v15 = vadd.f32 %v1742_v53, %v1741_v6  ;;  %v1566_v35 = vmul.f32 %v2337_v16, %v3397_v39  ;;  %v855_v57 = vpop.f32.mrb[40].mxu0  ;;  %2360 = vtanh.f32 %v844_v14 }
 0x177   : >> { %v2341_v22 = vpop.eup %2340  ;;  %v1744_v20 = vsel %vm1724_vm1, %v1553_v29, 0.0  ;;  %v1562_v3 = vmul.f32 %v2339_v1, %v3387_v34  ;;  %v2140_v59 = vpop.f32.mrb[40].mxu1  ;;  %2362 = vtanh.f32 %v1124_v52 }
 0x178   : >> { %v2343_v25 = vpop.eup %2342  ;;  %v1745_v61 = vadd.f32 %v1744_v20, %v1743_v15  ;;  %v1649_v44 = vadd.f32 %v1648_v0, %v1566_v35  ;;  %v1567_v18 = vmul.f32 %v2341_v22, %v3397_v39  ;;  %v857_v53 = vpop.f32.mrb[41].mxu0  ;;  %2364 = vtanh.f32 %v846_v21  ;;  %v4169_v15 = vld [vmem:[#allocation82_spill] sm:$0xff]  ;;  %v4170_v22 = vld [vmem:[#allocation89_spill] sm:$0xff] }
 0x179   : >> { %v3610_v2 = vpop.f32.mrb[41].mxu1  ;;  %v2345_v19 = vpop.eup %2344  ;;  %v1750_v10 = vsel %vm1724_vm1, %v1562_v3, 0.0  ;;  %v1559_v34 = vmul.f32 %v2343_v25, %v3383_v32  ;;  %v1119_v32 = vadd.f32 %v3584_v45, %v3371_v23  ;;  %v1134_v35 = vadd.f32 %v2137_v31, %v4169_v15  ;;  %v4171_v25 = vld [vmem:[#allocation81_spill] sm:$0xff] }
 0x17a   : >> { %v2347_v13 = vpop.eup %2346  ;;  %v3615_v62 = vpop.permute.xlu1 %1463  ;;  %v1694_v27 = vadd.f32 %v1693_v26, %v1567_v18  ;;  %v1747_v11 = vadd.f32 %v1746_v9, %v1745_v61  ;;  %v1569_v7 = vmul.f32 %v2345_v19, %v3407_v47  ;;  %v850_v9 = vadd.f32 %v849_v17, %v3375_v28 }
 0x17b   : >> { %v3617_v36 = vpop.permute.xlu0 %526  ;;  %v2349_v12 = vpop.eup %2348  ;;  %v1748_v30 = vsel %vm1724_vm1, %v1559_v34, 0.0  ;;  %v1568_v41 = vmul.f32 %v2347_v13, %v3397_v39  ;;  %2366 = vtanh.f32 %v1119_v32  ;;  %v852_v17 = vadd.f32 %v3597_v4, %v3375_v28 }
 0x17c   : >> { %v861_v40 = vpop.f32.mrb[42].mxu0  ;;  %v2143_v6 = vpop.f32.mrb[42].mxu1  ;;  %v1749_v24 = vadd.f32 %v1748_v30, %v1747_v11  ;;  %v1650_v46 = vadd.f32 %v1649_v44, %v1569_v7  ;;  %v1570_v16 = vmul.f32 %v2349_v12, %v3407_v47  ;;  %2368 = vtanh.f32 %v850_v9  ;;  %v4172_v11 = vld [vmem:[#allocation84_spill] sm:$0xff] }
 0x17d   : >> { %v2351_v0 = vpop.eup %2350  ;;  %v863_v29 = vpop.f32.mrb[43].mxu0  ;;  %v1754_v26 = vsel %vm1724_vm1, %v1568_v41, 0.0  ;;  %2370 = vtanh.f32 %v1134_v35  ;;  %v1129_v61 = vadd.f32 %v3599_v33, %v4171_v25  ;;  %v1144_v28 = vadd.f32 %v2140_v59, %v4172_v11  ;;  %v4175_v35 = vld [vmem:[#allocation86_spill] sm:$0xff] }
 0x17e   : >> { %v1148_v54 = vpop.f32.mrb[43].mxu1  ;;  %v2353_v1 = vpop.eup %2352  ;;  %v1565_v39 = vmul.f32 %v2351_v0, %v3393_v37  ;;  %v1695_v23 = vadd.f32 %v1694_v27, %v1570_v16  ;;  %v1751_v45 = vadd.f32 %v1750_v10, %v1749_v24  ;;  %v856_v10 = vadd.f32 %v855_v57, %v4171_v25  ;;  %v4173_v0 = vld [vmem:[#allocation83_spill] sm:$0xff] }
 0x17f   : >> { %v1572_v20 = vmul.f32 %v2353_v1, %v4170_v22  ;;  %v2355_v3 = vpop.eup %2354  ;;  %v867_v44 = vpop.f32.mrb[44].mxu0  ;;  %2372 = vtanh.f32 %v852_v17  ;;  %v858_v4 = vadd.f32 %v857_v53, %v4171_v25  ;;  %v1139_v24 = vadd.f32 %v3610_v2, %v4173_v0  ;;  %v4174_v1 = vld [vmem:[#allocation95_spill] sm:$0xff]  ;;  %v4177_v17 = vld [vmem:[#allocation85_spill] sm:$0xff] }
 0x180   : >> { %v1752_v14 = vsel %vm1724_vm1, %v1565_v39, 0.0  ;;  %v2146_v37 = vpop.f32.mrb[44].mxu1  ;;  %v2357_v18 = vpop.eup %2356  ;;  %v1574_v19 = vmul.f32 %v2355_v3, %v4170_v22  ;;  %2374 = vtanh.f32 %v1129_v61  ;;  %v862_v59 = vadd.f32 %v861_v40, %v4169_v15 }
 0x181   : >> { %v1753_v52 = vadd.f32 %v1752_v14, %v1751_v45  ;;  %v1651_v31 = vadd.f32 %v1650_v46, %v1572_v20  ;;  %v869_v34 = vpop.f32.mrb[45].mxu0  ;;  %v1158_v21 = vpop.f32.mrb[45].mxu1  ;;  %v1573_v27 = vmul.f32 %v2357_v18, %v4170_v22  ;;  %2376 = vtanh.f32 %v856_v10  ;;  %v4176_v20 = vld [vmem:[#allocation100_spill] sm:$0xff] }
 0x182   : >> { %v2359_v13 = vpop.eup %2358  ;;  %v3640_v33 = vpop.permute.xlu1 %1468  ;;  %v1758_v12 = vsel %vm1724_vm1, %v1574_v19, 0.0  ;;  %2378 = vtanh.f32 %v1144_v28  ;;  %v864_v2 = vadd.f32 %v863_v29, %v4169_v15  ;;  %v1149_v25 = vadd.f32 %v1148_v54, %v4177_v17  ;;  %v4178_v28 = vld [vmem:[#allocation88_spill] sm:$0xff] }
 0x183   : >> { %v3642_v7 = vpop.permute.xlu0 %531  ;;  %v1571_v30 = vmul.f32 %v2359_v13, %v3407_v47  ;;  %v1755_v41 = vadd.f32 %v1754_v26, %v1753_v52  ;;  %v2361_v57 = vpop.eup %2360  ;;  %v1696_v32 = vadd.f32 %v1695_v23, %v1573_v27  ;;  %v1154_v47 = vadd.f32 %v2143_v6, %v4175_v35 }
 0x184   : >> { %v873_v46 = vpop.f32.mrb[46].mxu0  ;;  %v2149_v53 = vpop.f32.mrb[46].mxu1  ;;  %v1575_v39 = vmul.f32 %v2361_v57, %v4174_v1  ;;  %2380 = vtanh.f32 %v858_v4  ;;  %v868_v6 = vadd.f32 %v867_v44, %v4173_v0  ;;  %v1164_v29 = vadd.f32 %v2146_v37, %v4178_v28  ;;  %v4179_v37 = vld [vmem:[#allocation87_spill] sm:$0xff] }
 0x185   : >> { %v2363_v16 = vpop.eup %2362  ;;  %v1756_v9 = vsel %vm1724_vm1, %v1571_v30, 0.0  ;;  %v875_v26 = vpop.f32.mrb[47].mxu0  ;;  %2382 = vtanh.f32 %v1139_v24  ;;  %v870_v44 = vadd.f32 %v869_v34, %v4173_v0  ;;  %v1159_v24 = vadd.f32 %v1158_v21, %v4179_v37 }
 0x186   : >> { %v1168_v45 = vpop.f32.mrb[47].mxu1  ;;  %v2365_v22 = vpop.eup %2364  ;;  %v1757_v23 = vadd.f32 %v1756_v9, %v1755_v41  ;;  %v1580_v3 = vmul.f32 %v2363_v16, %v4176_v20  ;;  %v1652_v40 = vadd.f32 %v1651_v31, %v1575_v39  ;;  %2384 = vtanh.f32 %v862_v59 }
 0x187   : >> { %v1576_v14 = vmul.f32 %v2365_v22, %v4174_v1  ;;  %v2367_v61 = vpop.eup %2366  ;;  %v879_v52 = vpop.f32.mrb[48].mxu0  ;;  %2386 = vtanh.f32 %v1154_v47 }
 0x188   : >> { %v1759_v18 = vadd.f32 %v1758_v12, %v1757_v23  ;;  %v2152_v19 = vpop.f32.mrb[48].mxu1  ;;  %v2369_v10 = vpop.eup %2368  ;;  %v1577_v27 = vmul.f32 %v2367_v61, %v4174_v1  ;;  %v1762_v54 = vsel %vm1724_vm1, %v1580_v3, 0.0  ;;  %2388 = vtanh.f32 %v864_v2 }
 0x189   : >> { %v1697_v13 = vadd.f32 %v1696_v32, %v1576_v14  ;;  %v881_v15 = vpop.f32.mrb[49].mxu0  ;;  %v3659_v31 = vpop.f32.mrb[49].mxu1  ;;  %v1578_v12 = vmul.f32 %v2369_v10, %v4176_v20  ;;  %2390 = vtanh.f32 %v1149_v25  ;;  %v874_v1 = vadd.f32 %v873_v46, %v4172_v11 }
 0x18a   : >> { %v2371_v4 = vpop.eup %2370  ;;  %v3664_v30 = vpop.permute.xlu1 %1473  ;;  %v1760_v57 = vsel %vm1724_vm1, %v1577_v27, 0.0  ;;  %2392 = vtanh.f32 %v868_v6  ;;  %v1174_v23 = vadd.f32 %v2149_v53, %v3453_v43  ;;  %v876_v25 = vadd.f32 %v875_v26, %v4172_v11 }
 0x18b   : >> { %v3666_v41 = vpop.permute.xlu0 %536  ;;  %v1586_v32 = vmul.f32 %v2371_v4, %v3506_v60  ;;  %v2373_v59 = vpop.eup %2372  ;;  %v1761_v16 = vadd.f32 %v1760_v57, %v1759_v18  ;;  %v1653_v9 = vadd.f32 %v1652_v40, %v1578_v12  ;;  %2394 = vtanh.f32 %v1164_v29  ;;  %v4180_v40 = vld [vmem:[#allocation105_spill] sm:$0xff] }
 0x18c   : >> { %v3672_v39 = vpop.f32.mrb[50].mxu0  ;;  %v3674_v34 = vpop.f32.mrb[50].mxu1  ;;  %v1579_v22 = vmul.f32 %v2373_v59, %v4176_v20  ;;  %2396 = vtanh.f32 %v870_v44  ;;  %v4181_v20 = vld [vmem:[#allocation92_spill] sm:$0xff]  ;;  %v880_v53 = vadd.f32 %v879_v52, %v4177_v17  ;;  %v1184_v29 = vadd.f32 %v2152_v19, %v3494_v63 }
 0x18d   : >> { %v2375_v0 = vpop.eup %2374  ;;  %v1766_v47 = vsel %vm1724_vm1, %v1586_v32, 0.0  ;;  %v3679_v3 = vpop.f32.mrb[51].mxu0  ;;  %v1763_v46 = vadd.f32 %v1762_v54, %v1761_v16  ;;  %2398 = vtanh.f32 %v1159_v24  ;;  %v1169_v10 = vadd.f32 %v1168_v45, %v4181_v20 }
 0x18e   : >> { %v3681_v21 = vpop.f32.mrb[51].mxu1  ;;  %v2377_v2 = vpop.eup %2376  ;;  %v1583_v14 = vmul.f32 %v2375_v0, %v4180_v40  ;;  %v1698_v18 = vadd.f32 %v1697_v13, %v1579_v22  ;;  %2400 = vtanh.f32 %v874_v1  ;;  %v882_v19 = vadd.f32 %v881_v15, %v4177_v17 }
 0x18f   : >> { %v2379_v61 = vpop.eup %2378  ;;  %v1581_v6 = vmul.f32 %v2377_v2, %v4180_v40  ;;  %v3690_v4 = vpop.f32.mrb[52].mxu0  ;;  %2402 = vtanh.f32 %v1174_v23  ;;  %v1179_v2 = vadd.f32 %v3659_v31, %v3472_v48  ;;  %v886_v48 = vadd.f32 %v3672_v39, %v4175_v35 }
 0x190   : >> { %v2381_v27 = vpop.eup %2380  ;;  %v1764_v43 = vsel %vm1724_vm1, %v1583_v14, 0.0  ;;  %v3692_v54 = vpop.f32.mrb[52].mxu1  ;;  %v1592_v52 = vmul.f32 %v2379_v61, %v3547_v5  ;;  %2404 = vtanh.f32 %v876_v25 }
 0x191   : >> { %v2383_v11 = vpop.eup %2382  ;;  %v1765_v26 = vadd.f32 %v1764_v43, %v1763_v46  ;;  %v1654_v13 = vadd.f32 %v1653_v9, %v1581_v6  ;;  %v1582_v12 = vmul.f32 %v2381_v27, %v4180_v40  ;;  %v3695_v44 = vpop.f32.mrb[53].mxu0  ;;  %2406 = vtanh.f32 %v1169_v10 }
 0x192   : >> { %v3697_v45 = vpop.f32.mrb[53].mxu1  ;;  %v2385_v57 = vpop.eup %2384  ;;  %v1589_v63 = vmul.f32 %v2383_v11, %v3523_v50  ;;  %2408 = vtanh.f32 %v880_v53  ;;  %v1770_v6 = vsel %vm1724_vm1, %v1592_v52, 0.0 }
 0x193   : >> { %v3699_v32 = vpop.permute.xlu1 %1478  ;;  %v2387_v24 = vpop.eup %2386  ;;  %v1699_v16 = vadd.f32 %v1698_v18, %v1582_v12  ;;  %v1767_v9 = vadd.f32 %v1766_v47, %v1765_v26  ;;  %v1584_v1 = vmul.f32 %v2385_v57, %v3506_v60  ;;  %2410 = vtanh.f32 %v1184_v29 }
 0x194   : >> { %v3704_v59 = vpop.permute.xlu0 %541  ;;  %v2389_v0 = vpop.eup %2388  ;;  %v1768_v22 = vsel %vm1724_vm1, %v1589_v63, 0.0  ;;  %v1598_v23 = vmul.f32 %v2387_v24, %v3589_v49  ;;  %2412 = vtanh.f32 %v882_v19  ;;  %v888_v24 = vadd.f32 %v3679_v3, %v4175_v35 }
 0x195   : >> { %v3711_v40 = vpop.f32.mrb[54].mxu0  ;;  %v3713_v17 = vpop.f32.mrb[54].mxu1  ;;  %v1769_v14 = vadd.f32 %v1768_v22, %v1767_v9  ;;  %v1655_v46 = vadd.f32 %v1654_v13, %v1584_v1  ;;  %v1585_v47 = vmul.f32 %v2389_v0, %v3506_v60  ;;  %2414 = vtanh.f32 %v1179_v2 }
 0x196   : >> { %v2391_v15 = vpop.eup %2390  ;;  %v3716_v25 = vpop.f32.mrb[55].mxu0  ;;  %v1774_v11 = vsel %vm1724_vm1, %v1598_v23, 0.0  ;;  %2416 = vtanh.f32 %v886_v48  ;;  %v1194_v13 = vadd.f32 %v3674_v34, %v3642_v7  ;;  %v1189_v34 = vadd.f32 %v3681_v21, %v3617_v36 }
 0x197   : >> { %v3718_v61 = vpop.f32.mrb[55].mxu1  ;;  %v2393_v18 = vpop.eup %2392  ;;  %v1595_v10 = vmul.f32 %v2391_v15, %v3569_v8  ;;  %v1700_v27 = vadd.f32 %v1699_v16, %v1585_v47  ;;  %v1771_v43 = vadd.f32 %v1770_v6, %v1769_v14  ;;  %v892_v14 = vadd.f32 %v3690_v4, %v4179_v37 }
 0x198   : >> { %v2395_v31 = vpop.eup %2394  ;;  %v1587_v53 = vmul.f32 %v2393_v18, %v3523_v50  ;;  %v3725_v29 = vpop.permute.xlu1 %551  ;;  %2418 = vtanh.f32 %v1194_v13  ;;  %v1204_v6 = vadd.f32 %v3692_v54, %v3704_v59 }
 0x199   : >> { %v2397_v60 = vpop.eup %2396  ;;  %v1772_v26 = vsel %vm1724_vm1, %v1595_v10, 0.0  ;;  %v3731_v12 = vpop.f32.mrb[56].mxu0  ;;  %v1604_v1 = vmul.f32 %v2395_v31, %v3640_v33  ;;  %2420 = vtanh.f32 %v888_v24 }
 0x19a   : >> { %v2399_v39 = vpop.eup %2398  ;;  %v3733_v57 = vpop.permute.xlu0 %546  ;;  %v1773_v52 = vadd.f32 %v1772_v26, %v1771_v43  ;;  %v1656_v63 = vadd.f32 %v1655_v46, %v1587_v53  ;;  %v1588_v19 = vmul.f32 %v2397_v60, %v3523_v50  ;;  %2422 = vtanh.f32 %v1189_v34 }
 0x19b   : >> { %v3738_v16 = vpop.f32.mrb[57].mxu0  ;;  %v2401_v9 = vpop.eup %2400  ;;  %v1601_v0 = vmul.f32 %v2399_v39, %v3615_v62  ;;  %v1778_v48 = vsel %vm1724_vm1, %v1604_v1, 0.0  ;;  %2424 = vtanh.f32 %v892_v14  ;;  %v1199_v39 = vadd.f32 %v3697_v45, %v3666_v41 }
 0x19c   : >> { %v2403_v22 = vpop.eup %2402  ;;  %v1701_v23 = vadd.f32 %v1700_v27, %v1588_v19  ;;  %v1775_v2 = vadd.f32 %v1774_v11, %v1773_v52  ;;  %v1590_v15 = vmul.f32 %v2401_v9, %v3547_v5  ;;  %v894_v27 = vadd.f32 %v3695_v44, %v4179_v37  ;;  %v3756_v53 = vpop.permute.xlu1 %1488 }
 0x19d   : >> { %v2405_v50 = vpop.eup %2404  ;;  %v1776_v35 = vsel %vm1724_vm1, %v1601_v0, 0.0  ;;  %v1610_v3 = vmul.f32 %v2403_v22, %v3699_v32  ;;  %2426 = vtanh.f32 %v1204_v6  ;;  %v898_v19 = vadd.f32 %v3711_v40, %v4178_v28 }
 0x19e   : >> { %v2407_v46 = vpop.eup %2406  ;;  %v1777_v47 = vadd.f32 %v1776_v35, %v1775_v2  ;;  %v1657_v18 = vadd.f32 %v1656_v63, %v1590_v15  ;;  %v1591_v21 = vmul.f32 %v2405_v50, %v3547_v5  ;;  %v3758_v4 = vpop.permute.xlu0 %1483  ;;  %2428 = vtanh.f32 %v894_v27 }
 0x19f   : >> { %v2409_v10 = vpop.eup %2408  ;;  %v1607_v31 = vmul.f32 %v2407_v46, %v3664_v30  ;;  %v1782_v26 = vsel %vm1724_vm1, %v1610_v3, 0.0  ;;  %2430 = vtanh.f32 %v1199_v39  ;;  %v1214_v0 = vadd.f32 %v3713_v17, %v3725_v29 }
 0x1a0   : >> { %v2411_v43 = vpop.eup %2410  ;;  %v1702_v60 = vadd.f32 %v1701_v23, %v1591_v21  ;;  %v1779_v11 = vadd.f32 %v1778_v48, %v1777_v47  ;;  %v1593_v5 = vmul.f32 %v2409_v10, %v3569_v8  ;;  %2432 = vtanh.f32 %v898_v19  ;;  %v3780_v3 = vpop.permute.xlu1 %1498 }
 0x1a1   : >> { %v2413_v54 = vpop.eup %2412  ;;  %v1780_v13 = vsel %vm1724_vm1, %v1607_v31, 0.0  ;;  %v1616_v9 = vmul.f32 %v2411_v43, %v3756_v53  ;;  %v900_v15 = vadd.f32 %v3716_v25, %v4178_v28  ;;  %v1209_v50 = vadd.f32 %v3718_v61, %v3733_v57  ;;  %v4183_v31 = vld [vmem:[#allocation91_spill] sm:$0xff] }
 0x1a2   : >> { %v2415_v37 = vpop.eup %2414  ;;  %v1781_v44 = vadd.f32 %v1780_v13, %v1779_v11  ;;  %v1658_v52 = vadd.f32 %v1657_v18, %v1593_v5  ;;  %v1594_v63 = vmul.f32 %v2413_v54, %v3569_v8  ;;  %v4182_v8 = vld [vmem:[#allocation90_spill] sm:$0xff]  ;;  %v3782_v17 = vpop.permute.xlu0 %1493  ;;  %2434 = vtanh.f32 %v1214_v0 }
 0x1a3   : >> { %v2417_v24 = vpop.eup %2416  ;;  %v1613_v1 = vmul.f32 %v2415_v37, %v3758_v4  ;;  %v928_v2 = vadd.f32 %v4182_v8, %v3617_v36  ;;  %v904_v47 = vadd.f32 %v3731_v12, %v4181_v20  ;;  %v1786_v21 = vsel %vm1724_vm1, %v1616_v9, 0.0  ;;  %v4185_v54 = vld [vmem:[#allocation94_spill] sm:$0xff] }
 0x1a4   : >> { %v1703_v34 = vadd.f32 %v1702_v60, %v1594_v63  ;;  %v1783_v22 = vadd.f32 %v1782_v26, %v1781_v44  ;;  %v1596_v45 = vmul.f32 %v2417_v24, %v3589_v49  ;;  %v2419_v23 = vpop.eup %2418  ;;  %2436 = vtanh.f32 %v900_v15  ;;  %v3800_v13 = vpop.permute.xlu1 %1508  ;;  %v4186_v63 = vld [vmem:[#allocation96_spill] sm:$0xff] }
 0x1a5   : >> { %v1784_v40 = vsel %vm1724_vm1, %v1613_v1, 0.0  ;;  %v2421_v35 = vpop.eup %2420  ;;  %v906_v28 = vadd.f32 %v3738_v16, %v4181_v20  ;;  %v1622_v25 = vmul.f32 %v2419_v23, %v3780_v3  ;;  %2438 = vtanh.f32 %v1209_v50  ;;  %v4184_v20 = vld [vmem:[#allocation93_spill] sm:$0xff] }
 0x1a6   : >> { %v1785_v14 = vadd.f32 %v1784_v40, %v1783_v22  ;;  %v1659_v46 = vadd.f32 %v1658_v52, %v1596_v45  ;;  %v2423_v18 = vpop.eup %2422  ;;  %v1597_v6 = vmul.f32 %v2421_v35, %v3589_v49  ;;  %v930_v27 = vadd.f32 %v4183_v31, %v3617_v36  ;;  %v3802_v36 = vpop.permute.xlu0 %1503  ;;  %v4187_v1 = vld [vmem:[#allocation97_spill] sm:$0xff]  ;;  %v4189_v35 = vld [vmem:[#allocation99_spill] sm:$0xff] }
 0x1a7   : >> { %v1619_v61 = vmul.f32 %v2423_v18, %v3782_v17  ;;  %v2425_v48 = vpop.eup %2424  ;;  %2440 = vtanh.f32 %v904_v47  ;;  %v934_v16 = vadd.f32 %v4184_v20, %v3642_v7  ;;  %v936_v26 = vadd.f32 %v4185_v54, %v3642_v7 }
 0x1a8   : >> { %v1787_v10 = vadd.f32 %v1786_v21, %v1785_v14  ;;  %v1704_v12 = vadd.f32 %v1703_v34, %v1597_v6  ;;  %v2427_v43 = vpop.eup %2426  ;;  %v1599_v49 = vmul.f32 %v2425_v48, %v3615_v62  ;;  %2442 = vtanh.f32 %v906_v28  ;;  %v4190_v28 = vld [vmem:[#allocation103_spill] sm:$0xff] }
 0x1a9   : >> { %v1788_v60 = vsel %vm1724_vm1, %v1619_v61, 0.0  ;;  %v2429_v11 = vpop.eup %2428  ;;  %2444 = vtanh.f32 %v928_v2  ;;  %v1790_v39 = vsel %vm1724_vm1, %v1622_v25, 0.0  ;;  %v940_v19 = vadd.f32 %v4186_v63, %v3666_v41  ;;  %v4188_v2 = vld [vmem:[#allocation98_spill] sm:$0xff] }
 0x1aa   : >> { %v1789_v5 = vadd.f32 %v1788_v60, %v1787_v10  ;;  %v1660_v37 = vadd.f32 %v1659_v46, %v1599_v49  ;;  %v1600_v44 = vmul.f32 %v2429_v11, %v3615_v62  ;;  %v2431_v52 = vpop.eup %2430  ;;  %2446 = vtanh.f32 %v930_v27  ;;  %v3818_v46 = vpop.permute.xlu1 %1518  ;;  %v4191_v27 = vld [vmem:[#allocation104_spill] sm:$0xff]  ;;  %v4192_v49 = vld [vmem:[#allocation101_spill] sm:$0xff] }
 0x1ab   : >> { %v2433_v9 = vpop.eup %2432  ;;  %v942_v0 = vadd.f32 %v4187_v1, %v3666_v41  ;;  %v1628_v7 = vmul.f32 %v2427_v43, %v3800_v13  ;;  %v1625_v22 = vmul.f32 %v2431_v52, %v3802_v36  ;;  %2448 = vtanh.f32 %v934_v16  ;;  %v3820_v47 = vpop.permute.xlu0 %1513 }
 0x1ac   : >> { %v1791_v24 = vadd.f32 %v1790_v39, %v1789_v5  ;;  %v1705_v34 = vadd.f32 %v1704_v12, %v1600_v44  ;;  %v1602_v45 = vmul.f32 %v2433_v9, %v3640_v33  ;;  %v2435_v23 = vpop.eup %2434  ;;  %2450 = vtanh.f32 %v936_v26  ;;  %v4193_v5 = vld [vmem:[#allocation102_spill] sm:$0xff] }
 0x1ad   : >> { %v1792_v62 = vsel %vm1724_vm1, %v1625_v22, 0.0  ;;  %2452 = vtanh.f32 %v940_v19  ;;  %v946_v40 = vadd.f32 %v4188_v2, %v3704_v59  ;;  %v948_v14 = vadd.f32 %v4189_v35, %v3704_v59 }
 0x1ae   : >> { %v2437_v8 = vpop.eup %2436  ;;  %v1793_v15 = vadd.f32 %v1792_v62, %v1791_v24  ;;  %v1661_v41 = vadd.f32 %v1660_v37, %v1602_v45  ;;  %2454 = vtanh.f32 %v942_v0  ;;  %v1794_v18 = vsel %vm1724_vm1, %v1628_v7, 0.0 }
 0x1af   : >> { %v2439_v50 = vpop.eup %2438  ;;  %v1603_v21 = vmul.f32 %v2437_v8, %v3640_v33  ;;  %v958_v25 = vadd.f32 %v4190_v28, %v3725_v29  ;;  %v1634_v61 = vmul.f32 %v2435_v23, %v3818_v46  ;;  %v1608_v59 = vmul.f32 %v3516_v51, %v3699_v32 }
 0x1b0   : >> { %v1631_v10 = vmul.f32 %v2439_v50, %v3820_v47  ;;  %v1795_v48 = vadd.f32 %v1794_v18, %v1793_v15  ;;  %v960_v12 = vadd.f32 %v4191_v27, %v3725_v29  ;;  %2456 = vtanh.f32 %v946_v40 }
 0x1b1   : >> { %v2441_v6 = vpop.eup %2440  ;;  %v1706_v43 = vadd.f32 %v1705_v34, %v1603_v21  ;;  %v952_v11 = vadd.f32 %v4192_v49, %v3733_v57  ;;  %2458 = vtanh.f32 %v948_v14  ;;  %v954_v54 = vadd.f32 %v4193_v5, %v3733_v57 }
 0x1b2   : >> { %v2443_v31 = vpop.eup %2442  ;;  %v1605_v60 = vmul.f32 %v2441_v6, %v3664_v30  ;;  %v1796_v16 = vsel %vm1724_vm1, %v1631_v10, 0.0  ;;  %v1609_v29 = vmul.f32 %v3519_v58, %v3699_v32  ;;  %2460 = vtanh.f32 %v958_v25 }
 0x1b3   : >> { %v2445_v33 = vpop.eup %2444  ;;  %v1606_v20 = vmul.f32 %v2443_v31, %v3664_v30  ;;  %v1797_v26 = vadd.f32 %v1796_v16, %v1795_v48  ;;  %v1799_v44 = vsel %vm1798_vm2, %v1634_v61, 0.0  ;;  %2462 = vtanh.f32 %v960_v12 }
 0x1b4   : >> { %v1662_v51 = vadd.f32 %v1661_v41, %v1605_v60  ;;  %v2447_v39 = vpop.eup %2446  ;;  %v1611_v30 = vmul.f32 %v3530_v55, %v3758_v4  ;;  %2464 = vtanh.f32 %v952_v11  ;;  %v1612_v57 = vmul.f32 %v3535_v56, %v3758_v4 }
 0x1b5   : >> { %v1707_v37 = vadd.f32 %v1706_v43, %v1606_v20  ;;  %v1800_v63 = vadd.f32 %v1799_v44, %v1797_v26  ;;  %v2449_v19 = vpop.eup %2448  ;;  %2466 = vtanh.f32 %v954_v54  ;;  %v1614_v58 = vmul.f32 %v3538_v38, %v3756_v53 }
 0x1b6   : >> { %v1663_v52 = vadd.f32 %v1662_v51, %v1608_v59  ;;  %v2451_v9 = vpop.eup %2450  ;;  %v1615_v0 = vmul.f32 %v3542_v42, %v3756_v53  ;;  %v1617_v34 = vmul.f32 %v2445_v33, %v3782_v17  ;;  %v1618_v45 = vmul.f32 %v2447_v39, %v3782_v17 }
 0x1b7   : >> { %v1708_v24 = vadd.f32 %v1707_v37, %v1609_v29  ;;  %v2453_v1 = vpop.eup %2452  ;;  %v1620_v56 = vmul.f32 %v2449_v19, %v3780_v3  ;;  %v1621_v8 = vmul.f32 %v2451_v9, %v3780_v3  ;;  %v1801_v42 = vrot.slane %v1800_v63, 4 }
 0x1b8   : >> { %v1664_v32 = vadd.f32 %v1663_v52, %v1611_v30  ;;  %v2455_v55 = vpop.eup %2454  ;;  %v1623_v40 = vmul.f32 %v2453_v1, %v3802_v36 }
 0x1b9   : >> { %v1709_v7 = vadd.f32 %v1708_v24, %v1612_v57  ;;  %v1624_v41 = vmul.f32 %v2455_v55, %v3802_v36  ;;  %v1802_v48 = vadd.f32 %v1801_v42, %v1800_v63 }
 0x1ba   : >> { %v1665_v22 = vadd.f32 %v1664_v32, %v1614_v58  ;;  %v2457_v62 = vpop.eup %2456 }
 0x1bb   : >> { %v1710_v23 = vadd.f32 %v1709_v7, %v1615_v0  ;;  %v2459_v2 = vpop.eup %2458  ;;  %v1626_v17 = vmul.f32 %v2457_v62, %v3800_v13 }
 0x1bc   : >> { %v1666_v4 = vadd.f32 %v1665_v22, %v1617_v34  ;;  %v2461_v53 = vpop.eup %2460  ;;  %v1627_v21 = vmul.f32 %v2459_v2, %v3800_v13  ;;  %v1803_v13 = vrot.slane %v1802_v48, 2 }
 0x1bd   : >> { %v1711_v38 = vadd.f32 %v1710_v23, %v1618_v45  ;;  %v2463_v35 = vpop.eup %2462  ;;  %v1632_v3 = vmul.f32 %v2461_v53, %v3818_v46 }
 0x1be   : >> { %v1667_v15 = vadd.f32 %v1666_v4, %v1620_v56  ;;  %v2465_v18 = vpop.eup %2464  ;;  %v1633_v25 = vmul.f32 %v2463_v35, %v3818_v46  ;;  %v1804_v16 = vadd.f32 %v1803_v13, %v1802_v48  ;;  %v2550_v4 = vmov 1966171168  }
 0x1bf   : >> { %v1712_v50 = vadd.f32 %v1711_v38, %v1621_v8  ;;  %v2467_v28 = vpop.eup %2466  ;;  %v1629_v61 = vmul.f32 %v2465_v18, %v3820_v47  ;;  %v1672_v27 = vsel %vm1671_vm3, %v1632_v3, 0.0  ;;  %v1835_v62 = vunpack.c.l.s4 %v2550_v4 }
 0x1c0   : >> { %v1668_v14 = vadd.f32 %v1667_v15, %v1623_v40  ;;  %v1630_v36 = vmul.f32 %v2467_v28, %v3820_v47  ;;  %v1716_v43 = vsel %vm1671_vm3, %v1633_v25, 0.0  ;;  %v1805_v26 = vrot.slane %v1804_v16, 1 }
 0x1c1   : >> { %v1713_v6 = vadd.f32 %v1712_v50, %v1624_v41  ;;  %v1837_v8 = vlaneseq  ;;  %v1836_v38 = vunpack.c.0.s8 %v1835_v62 }
 0x1c2   : >> { %v1669_v10 = vadd.f32 %v1668_v14, %v1626_v17  ;;  %v1806_v44 = vadd.f32 %v1805_v26, %v1804_v16 }
 0x1c3   : >> { %v1714_v31 = vadd.f32 %v1713_v6, %v1627_v21  ;;  %v1838_v2 = vshrl.u32 %v1837_v8, 7  ;;  %vm1861_vm4 = vcmp.lt.s32.totalorder %v1837_v8, 300 }
 0x1c4   : >> { %v1670_v59 = vadd.f32 %v1669_v10, %v1629_v61  ;;  %v1807_v63 = vsel %vm1724_vm1, %v1806_v44, -inf }
 0x1c5   : >> { %v1715_v12 = vadd.f32 %v1714_v31, %v1630_v36  ;;  %v1839_v15 = vsub.s32 %v1836_v38, %v1838_v2 }
 0x1c6   : >> { %v1673_v60 = vadd.f32 %v1672_v27, %v1670_v59 }
 0x1c7   : >> { %v1717_v33 = vadd.f32 %v1716_v43, %v1715_v12 }
 0x1c8   : >> { %v1674_v49 = vrot.slane %v1673_v60, 4 }
 0x1c9   : >> { %v1718_v11 = vrot.slane %v1717_v33, 4 }
 0x1ca   : >> { %v1675_v20 = vadd.f32 %v1674_v49, %v1673_v60 }
 0x1cb   : >> { %v1719_v5 = vadd.f32 %v1718_v11, %v1717_v33 }
 0x1cc   : >> { %v1676_v46 = vrot.slane %v1675_v20, 2 }
 0x1cd   : >> { %v1720_v54 = vrot.slane %v1719_v5, 2 }
 0x1ce   : >> { %v1677_v51 = vadd.f32 %v1676_v46, %v1675_v20 }
 0x1cf   : >> { %v1721_v39 = vadd.f32 %v1720_v54, %v1719_v5 }
 0x1d0   : >> { %v1678_v29 = vrot.slane %v1677_v51, 1 }
 0x1d1   : >> { %v1722_v47 = vrot.slane %v1721_v39, 1 }
 0x1d2   : >> { %v1679_v37 = vadd.f32 %v1678_v29, %v1677_v51 }
 0x1d3   : >> { %v1723_v30 = vadd.f32 %v1722_v47, %v1721_v39 }
 0x1d5   : >> { %v1808_v52 = vmax.f32 %v1679_v37, %v1723_v30 }
 0x1d7   : >> { %v1809_v19 = vmax.f32 %v1808_v52, %v1807_v63 }
 0x1d9   : >> { %1810 = vmax.xlane.f32.xlu0 %v1809_v19 }
 0x266   : >> { %v1811_v57 = vpop.xlane.xlu0 %1810 }
 0x267   : >> { %v1812_v24 = vsub.f32 %v1679_v37, %v1811_v57  ;;  %v1813_v9 = vsub.f32 %v1723_v30, %v1811_v57  ;;  %v1814_v58 = vsub.f32 %v1806_v44, %v1811_v57 }
 0x269   : >> { %v1815_v32 = vmul.f32 1.442695, %v1812_v24  ;;  %v1817_v1 = vmul.f32 1.442695, %v1813_v9  ;;  %v1819_v0 = vmul.f32 1.442695, %v1814_v58 }
 0x26b   : >> { %2468 = vpow2.f32 %v1815_v32 }
 0x26c   : >> { %2470 = vpow2.f32 %v1817_v1 }
 0x26d   : >> { %2472 = vpow2.f32 %v1819_v0 }
 0x275   : >> { %v2469_v7 = vpop.eup %2468 }
 0x276   : >> { %v2471_v55 = vpop.eup %2470 }
 0x277   : >> { %v2473_v34 = vpop.eup %2472  ;;  %v1821_v22 = vadd.f32 %v2471_v55, %v2469_v7 }
 0x278   : >> { %v1822_v45 = vsel %vm1724_vm1, %v2473_v34, 0.0 }
 0x279   : >> { %v1823_v23 = vadd.f32 %v1822_v45, %v1821_v22 }
 0x27b   : >> { %1824 = vadd.xlane.f32.xlu1 %v1823_v23 }
 0x308   : >> { %v1825_v56 = vpop.xlane.xlu1 %1824 }
 0x309   : >> { %2474 = vrcp.f32 %v1825_v56 }
 0x313   : >> { %v2475_v40 = vpop.eup %2474 }
 0x314   : >> { %v1827_v42 = vmul.f32 %v2475_v40, %v2469_v7  ;;  %v1828_v53 = vmul.f32 %v2475_v40, %v2471_v55  ;;  %v1829_v41 = vmul.f32 %v2475_v40, %v2473_v34 }
 0x316   : >> { %v1833_v50 = vcombine.low %v1827_v42, %v1828_v53  ;;  %v1847_v17 = vrot.slane %v1829_v41, %v1839_v15 }
 0x318   : >> { %v1840_v35 = vrot.slane %v1833_v50, %v1839_v15  ;;  %307 = sbr.rel (!%p305_p11) target bundleno = 60 (0x3c), region = 84 }
 0x31a   : >> { %v1848_v14 = vcombine.low %v1840_v35, %v1847_v17 }
 0x31c   : >> { %v1855_v18 = vrot.slane %v1848_v14, %v1839_v15 }
 0x31e   : >> { %1863 = vst.msk [vmem:[%s1858_s11] sm:$0x7] %vm1861_vm4, %v1855_v18 }
 0x31f   : > { %2489 = shalt.err (!%p2486_p4)
}
 0x320   : > { %s2490_s27 = scalar_lea.hbm %s3876_s23, 192  ;;  %s2494_s6 = scalar_lea.hbm %s3927_s4, 384 }
 0x321   : > { %p2491_p7 = scmp.ne.s32.totalorder %s3876_s23, %s2490_s27  ;;  %p2495_p10 = scmp.lt.u32.totalorder %s3876_s23, %s3927_s4 }
 0x322   : > { %p2496_p11 = scmp.lt.u32.totalorder %s2494_s6, %s2490_s27  ;;  %p2498_p13 = scmp.lt.u32.totalorder %s2490_s27, %s3876_s23 }
 0x323   : > { %p2492_p8 = pnand %p2491_p7, %p2617_p5 }
 0x324   : > { %p2497_p12 = por %p2496_p11, %p2495_p10 }
 0x325   : > { %p2493_p9 = pneg %p2492_p8 }
 0x326   : > { %p2499_p0 = por %p2498_p13, %p2497_p12 }
 0x328   : > { %p2500_p1 = pnand %p2499_p0, %p2493_p9 }
 0x32a   : > { %2503 = shalt.err (!%p2500_p1)
}
 0x32b   : > { %s2552_s10 = smov 48   ;;  %s2553_s11 = smov 3  }
 0x32c   : > { %2186 = dma.vmem_to_hbm [thread:$0]  (%p2617_p5), %s3878_s14, 192, %s3876_s23, %s3882_s30, %s2552_s10, %s2552_s10, %s2553_s11  }
 0x32d PF: > { %p2192_p2 = scmp.ge.s32.totalorder %s2542_s18, 2  ;;  %s1894_s13 = sand.u32 1, %s2530_s15  }
 0x32e   : > { %s1895_s28 = scalar_lea.sflag [#allocation3], %s1894_s13 }
 0x32f   : > { %p2189_p3 = pnand %p2192_p2, %p2621_p6 }
 0x331   : > { %2525 = dma.done.wait (!%p2189_p3), %s1895_s28, 192  }
 0x332   : > { %2527 = vsyncadd (!%p2189_p3), %s1895_s28, 4294967104  ;;  %p14_p4 = scmp.ge.s32.totalorder %s2604_s21, 4   ;;  %s4194_s15 = smov %s2534_s16 }
 0x333   : > { %s4195_s16 = smov %s2538_s17  ;;  %s4196_s17 = smov %s2615_s24 }
 0x334   : > { %s4197_s18 = smov %s2604_s21  ;;  %16 = sbr.rel (!%p14_p4) target bundleno = 3 (0x3), region = 95 }
 0x33b   :  { %1900 = vsyncpa [#allocation3], 1 }
 0x33c   :  { %1902 = vsyncpa [#allocation3 + $0x1], 1 }

</bundles_post_ra>
